<compile_context>
chip_gen: v7x
topology: tpu7x:2x2x1
jax: 0.10.0
libtpu: 0.0.40
codegen_flags: <defaults>
</compile_context>

<pallas_src>
import numpy as np
import jax
import jax.numpy as jnp
from jax import lax
from jax.experimental import pallas as pl
from jax.experimental.pallas import tpu as pltpu


# ----------------------------- glue helpers ---------------------------------

def _bilinear_matrix(n_in, n_out):
    """M[o, i] = bilinear (align_corners=True) weight of input i for output o."""
    m = np.zeros((n_out, n_in), dtype=np.float32)
    if n_out == 1 or n_in == 1:
        m[:, 0] = 1.0
        return m
    scale = (n_in - 1) / (n_out - 1)
    for o in range(n_out):
        s = o * scale
        i0 = min(int(np.floor(s)), n_in - 1)
        f = s - i0
        if i0 + 1 <= n_in - 1:
            m[o, i0] = 1.0 - f
            m[o, i0 + 1] = f
        else:
            m[o, i0] = 1.0
    return m


def _crop(x, new_hw):
    """Center crop NCHW tensor to (h_new, w_new) — same arithmetic as PyTorch crop."""
    _, _, h, w = x.shape
    h_new, w_new = new_hw
    ch, cw = h // 2, w // 2
    ch_new, cw_new = h_new // 2, w_new // 2
    x1 = int(cw - cw_new)
    y1 = int(ch - ch_new)
    return x[:, :, y1:y1 + h_new, x1:x1 + w_new]


# ------------------------------ forward (Pallas) ------------------------------

def expanding_block_forward(x, skip, params, batch_per_step=None):
    B, C, H, W = x.shape
    Ch = C // 2
    Hu, Wu = 2 * H, 2 * W                 # upsample / first conv ("same") size
    H1, W1 = Hu - 4, Wu - 4               # final output spatial size

    S = Wu + 2                            # canvas row stride (padded width)
    NVAL = (Hu + 2) * S                   # canvas pixels per image
    MAXOFF = 2 * S + 2                    # largest 3x3 tap lane offset
    NBUF = ((NVAL + MAXOFF + 127) // 128) * 128   # per-image lane block
    GUARD = ((MAXOFF + 127) // 128) * 128         # tail guard block

    # batch folding: GB images per grid step, laid side-by-side along lanes.
    # Default = full fold (best on 1-TC v5e/v6e); on v7x use B // 2 so the
    # 2-wide "parallel" grid axis feeds both TensorCores.
    GB = B if batch_per_step is None else batch_per_step
    assert B % GB == 0
    NG = B // GB
    HW = H * W
    GHW = GB * HW
    WLANE = GB * NBUF                     # folded canvas lane width (128-mult)
    WBUF = WLANE + GUARD                  # buffer width incl. tap-slice guard

    cdt = jnp.bfloat16                    # MXU operand dtype (f32 accumulate)
    wc, bc, w0, b0, w1, b1 = params

    # ---------------- layout plumbing (wrapper side, pure reshapes) -----------
    # x folded per group: (NG, C, GB*H*W), group-local batch j on lanes j*HW..
    x_g = (x.astype(jnp.float32).reshape(NG, GB, C, HW)
             .transpose(0, 2, 1, 3).reshape(NG, C, GHW).astype(cdt))

    # bilinear x2 (align_corners=True) + zero pad=1 folded into one matrix per
    # image, placed block-diagonally so ONE matmul upsamples the whole group:
    # m[j*HW + h*W + w, j*NBUF + p*S + q] = uph_pad[p, h] * upw_pad[w, q]
    uph_pad = np.zeros((Hu + 2, H), np.float32)
    uph_pad[1:-1] = _bilinear_matrix(H, Hu)
    upw_pad = np.zeros((W, S), np.float32)
    upw_pad[:, 1:-1] = _bilinear_matrix(W, Wu).T
    kb = np.kron(uph_pad.T, upw_pad)                      # (HW, NVAL)
    m_np = np.zeros((GHW, WBUF), np.float32)
    for j in range(GB):
        m_np[j * HW:(j + 1) * HW, j * NBUF:j * NBUF + NVAL] = kb
    m_mat = jnp.asarray(m_np).astype(cdt)

    # cropped skip, placed on the same flattened per-image canvases (only its
    # Ch rows are shipped; the concat happens inside the kernel's im2row).
    skip_c = _crop(skip.astype(jnp.float32), (Hu, Wu))            # (B,Ch,Hu,Wu)
    canvas = jnp.zeros((B, Ch, Hu + 2, S), jnp.float32)
    canvas = canvas.at[:, :, :Hu, :Wu].set(skip_c).reshape(B, Ch, NVAL)
    skip_blk = jnp.zeros((NG, GB, Ch, NBUF), jnp.float32)
    skip_blk = skip_blk.at[..., :NVAL].set(canvas.reshape(NG, GB, Ch, NVAL))
    skip_g = skip_blk.transpose(0, 2, 1, 3).reshape(NG, Ch, WLANE)
    skip_g = jnp.concatenate(
        [skip_g, jnp.zeros((NG, Ch, GUARD), jnp.float32)], axis=-1).astype(cdt)

    # im2row weights (cout, 9*cin), tap-major / channel-minor, + f32 biases
    wc_r = jnp.transpose(wc, (0, 2, 3, 1)).reshape(Ch, 9 * C).astype(cdt)
    w0_r = jnp.transpose(w0, (0, 2, 3, 1)).reshape(Ch, 9 * C).astype(cdt)
    w1_r = jnp.transpose(w1, (0, 2, 3, 1)).reshape(Ch, 9 * Ch).astype(cdt)
    bc_c = bc.reshape(Ch, 1).astype(jnp.float32)
    b0_c = b0.reshape(Ch, 1).astype(jnp.float32)
    b1_c = b1.reshape(Ch, 1).astype(jnp.float32)

    taps = tuple(ky * S + kx for ky in range(3) for kx in range(3))

    # ------------------------------- kernel -----------------------------------
    def kernel(x_ref, m_ref, skip_ref, wc_ref, bc_ref, w0_ref, b0_ref,
               w1_ref, b1_ref, o_ref, up_ref, uc_ref, h0_ref, im_ref):
        # only the guard lanes of the im2row scratch are never rewritten below;
        # zero them so every matmul operand lane is defined (tiny 128-lane fill)
        im_ref[:, WLANE:WBUF] = jnp.zeros((9 * C, GUARD), dtype=im_ref.dtype)

        # 1) bilinear x2 upsample + pad=1 for the whole batch group: ONE matmul
        up_ref[...] = jnp.dot(
            x_ref[...], m_ref[...],
            preferred_element_type=jnp.float32).astype(up_ref.dtype)

        def conv(w_ref, b_ref, k, relu):
            # one fused MXU matmul per conv: (cout, k) @ (k, WBUF), f32 acc
            acc = jnp.dot(w_ref[...], im_ref[0:k, :],
                          preferred_element_type=jnp.float32)
            acc = acc + b_ref[...]                       # (cout, 1) broadcast
            return jnp.maximum(acc, 0.0) if relu else acc

        # 2) self.conv (3x3, pad=1 baked into the canvas), no relu
        for t, off in enumerate(taps):                   # im2row of up canvas
            im_ref[t * C:(t + 1) * C, 0:WLANE] = up_ref[:, off:off + WLANE]
        uc_ref[...] = conv(wc_ref, bc_ref, 9 * C, relu=False).astype(uc_ref.dtype)

        # 3+4) concat(upconv, cropped skip) + conv3x3_0 + relu.  The concat is
        #      implicit: every im2row tap block is [upconv rows ; skip rows].
        for t, off in enumerate(taps):
            im_ref[t * C:t * C + Ch, 0:WLANE] = uc_ref[:, off:off + WLANE]
            im_ref[t * C + Ch:(t + 1) * C, 0:WLANE] = skip_ref[:, off:off + WLANE]
        h0_ref[...] = conv(w0_ref, b0_ref, 9 * C, relu=True).astype(h0_ref.dtype)

        # 5) conv3x3_1 (valid) + relu -> full-width unmasked lane-dense store
        for t, off in enumerate(taps):
            im_ref[t * Ch:(t + 1) * Ch, 0:WLANE] = h0_ref[:, off:off + WLANE]
        o_ref[...] = conv(w1_ref, b1_ref, 9 * Ch, relu=True)

    flat = pl.pallas_call(
        kernel,
        out_shape=jax.ShapeDtypeStruct((NG, Ch, WBUF), jnp.float32),
        grid_spec=pltpu.PrefetchScalarGridSpec(
            num_scalar_prefetch=0,
            grid=(NG,),
            in_specs=[
                pl.BlockSpec((None, C, GHW), lambda g: (g, 0, 0)),    # x (folded)
                pl.BlockSpec((GHW, WBUF), lambda g: (0, 0)),          # upsample mat
                pl.BlockSpec((None, Ch, WBUF), lambda g: (g, 0, 0)),  # skip rows
                pl.BlockSpec((Ch, 9 * C), lambda g: (0, 0)),          # wc (im2row)
                pl.BlockSpec((Ch, 1), lambda g: (0, 0)),              # bc
                pl.BlockSpec((Ch, 9 * C), lambda g: (0, 0)),          # w0 (im2row)
                pl.BlockSpec((Ch, 1), lambda g: (0, 0)),              # b0
                pl.BlockSpec((Ch, 9 * Ch), lambda g: (0, 0)),         # w1 (im2row)
                pl.BlockSpec((Ch, 1), lambda g: (0, 0)),              # b1
            ],
            out_specs=pl.BlockSpec((None, Ch, WBUF), lambda g: (g, 0, 0)),
            scratch_shapes=[
                pltpu.VMEM((C, WBUF), cdt),        # padded upsample canvas
                pltpu.VMEM((Ch, WBUF), cdt),       # upconv canvas
                pltpu.VMEM((Ch, WBUF), cdt),       # relu(conv3x3_0) canvas
                pltpu.VMEM((9 * C, WBUF), cdt),    # shared im2row scratch
            ],
        ),
        compiler_params=pltpu.CompilerParams(
            dimension_semantics=("parallel",),
            vmem_limit_bytes=32 * 1024 * 1024,
        ),
    )(x_g, m_mat, skip_g, wc_r, bc_c, w0_r, b0_c, w1_r, b1_c)

    # unfold lanes -> (B, Ch, canvas), then crop the valid H1 x W1 region
    flat = flat[:, :, :WLANE].reshape(NG, Ch, GB, NBUF)
    flat = jnp.transpose(flat, (0, 2, 1, 3)).reshape(B, Ch, NBUF)
    return flat[:, :, :NVAL].reshape(B, Ch, Hu + 2, S)[:, :, :H1, :W1]


# ------------------------- deterministic params ------------------------------

def init_params(key, hid_channels):
    C = hid_channels
    Ch = C // 2
    ks = jax.random.split(key, 6)

    def u(k, shape, fan_in):
        bound = 1.0 / np.sqrt(fan_in)
        return jax.random.uniform(k, shape, jnp.float32, -bound, bound)

    wc = u(ks[0], (Ch, C, 3, 3), C * 9)
    bc = u(ks[1], (Ch,), C * 9)
    w0 = u(ks[2], (Ch, C, 3, 3), C * 9)
    b0 = u(ks[3], (Ch,), C * 9)
    w1 = u(ks[4], (Ch, Ch, 3, 3), Ch * 9)
    b1 = u(ks[5], (Ch,), Ch * 9)
    return wc, bc, w0, b0, w1, b1


# ------------------------- pure-JAX reference --------------------------------

def reference_forward(x, skip, params):
    wc, bc, w0, b0, w1, b1 = params
    B, C, H, W = x.shape
    Hu, Wu = 2 * H, 2 * W
    uph = jnp.asarray(_bilinear_matrix(H, Hu))
    upw = jnp.asarray(_bilinear_matrix(W, Wu))
    up = jnp.einsum('ph,bchw,qw->bcpq', uph, x, upw,
                    precision=lax.Precision.HIGHEST)
    dn = ('NCHW', 'OIHW', 'NCHW')
    upconv = lax.conv_general_dilated(up, wc, (1, 1), ((1, 1), (1, 1)),
                                      dimension_numbers=dn,
                                      precision=lax.Precision.HIGHEST)
    upconv = upconv + bc[None, :, None, None]
    skip_c = _crop(skip, (Hu, Wu))
    fx = jnp.concatenate([upconv, skip_c], axis=1)
    h0 = lax.conv_general_dilated(fx, w0, (1, 1), ((0, 0), (0, 0)),
                                  dimension_numbers=dn,
                                  precision=lax.Precision.HIGHEST)
    h0 = jax.nn.relu(h0 + b0[None, :, None, None])
    h1 = lax.conv_general_dilated(h0, w1, (1, 1), ((0, 0), (0, 0)),
                                  dimension_numbers=dn,
                                  precision=lax.Precision.HIGHEST)
    return jax.nn.relu(h1 + b1[None, :, None, None])


# --------------------------------- main ---------------------------------------

if __name__ == "__main__":
    hid_channels = 8            # C=8 -> C/2=4
    B, H, W = 2, 8, 8           # x: (2, 8, 8, 8); skip: (2, 4, 20, 20)

    key = jax.random.PRNGKey(0)
    kx, ks, kp = jax.random.split(key, 3)
    x = jax.random.normal(kx, (B, hid_channels, H, W), jnp.float32)
    skip = jax.random.normal(ks, (B, hid_channels // 2, 2 * H + 4, 2 * W + 4),
                             jnp.float32)
    params = init_params(kp, hid_channels)

    out = expanding_block_forward(x, skip, params)
    out = jax.block_until_ready(out)

    ref = reference_forward(x, skip, params)
    assert out.shape == ref.shape == (B, hid_channels // 2, 2 * H - 4, 2 * W - 4)
    # kernel uses bf16 MXU operands with f32 accumulation; reference is all-f32
    # at HIGHEST precision, hence the 2e-2 tolerance.
    if not np.allclose(np.asarray(out), np.asarray(ref), atol=2e-2, rtol=2e-2):
        raise AssertionError(
            f"kernel/reference mismatch, max abs err "
            f"{float(jnp.max(jnp.abs(out - ref)))}")
    print("KERNEL_OK")
</pallas_src>

<mosaic_0001>
module attributes {stable_mosaic.version = 11 : i64} {
  func.func @kernel(%arg0: i32, %arg1: memref<1x8x128xbf16, #tpu.memory_space<vmem>>, %arg2: memref<128x896xbf16, #tpu.memory_space<vmem>>, %arg3: memref<1x4x896xbf16, #tpu.memory_space<vmem>>, %arg4: memref<4x72xbf16, #tpu.memory_space<vmem>>, %arg5: memref<4x1xf32, #tpu.memory_space<vmem>>, %arg6: memref<4x72xbf16, #tpu.memory_space<vmem>>, %arg7: memref<4x1xf32, #tpu.memory_space<vmem>>, %arg8: memref<4x36xbf16, #tpu.memory_space<vmem>>, %arg9: memref<4x1xf32, #tpu.memory_space<vmem>>, %arg10: memref<1x4x896xf32, #tpu.memory_space<vmem>>, %arg11: memref<8x896xbf16, #tpu.memory_space<vmem>>, %arg12: memref<4x896xbf16, #tpu.memory_space<vmem>>, %arg13: memref<4x896xbf16, #tpu.memory_space<vmem>>, %arg14: memref<72x896xbf16, #tpu.memory_space<vmem>>) attributes {dimension_semantics = [#tpu.dimension_semantics<parallel>], iteration_bounds = array<i64: 1>, scalar_prefetch = 0 : i64, scratch_operands = 4 : i64, tpu.core_type = #tpu.core_type<tc>, window_params = [{transform_indices = @transform_0, window_bounds = array<i64: 1, 8, 128>}, {pipeline_mode = #tpu.pipeline_mode<synchronous>, transform_indices = @transform_1, window_bounds = array<i64: 128, 896>}, {transform_indices = @transform_2, window_bounds = array<i64: 1, 4, 896>}, {pipeline_mode = #tpu.pipeline_mode<synchronous>, transform_indices = @transform_3, window_bounds = array<i64: 4, 72>}, {pipeline_mode = #tpu.pipeline_mode<synchronous>, transform_indices = @transform_4, window_bounds = array<i64: 4, 1>}, {pipeline_mode = #tpu.pipeline_mode<synchronous>, transform_indices = @transform_5, window_bounds = array<i64: 4, 72>}, {pipeline_mode = #tpu.pipeline_mode<synchronous>, transform_indices = @transform_6, window_bounds = array<i64: 4, 1>}, {pipeline_mode = #tpu.pipeline_mode<synchronous>, transform_indices = @transform_7, window_bounds = array<i64: 4, 36>}, {pipeline_mode = #tpu.pipeline_mode<synchronous>, transform_indices = @transform_8, window_bounds = array<i64: 4, 1>}, {transform_indices = @transform_9, window_bounds = array<i64: 1, 4, 896>}]} {
    %cst = arith.constant 0.000000e+00 : bf16
    %0 = vector.broadcast %cst : bf16 to vector<72x128xbf16>
    %c0 = arith.constant 0 : index
    %c768 = arith.constant 768 : index
    %1 = vector.load %arg14[%c0, %c768] : memref<72x896xbf16, #tpu.memory_space<vmem>>, vector<72x128xbf16>
    tpu.vector_store %arg14[%c0, %c768], %0 {strides = array<i32>} : memref<72x896xbf16, #tpu.memory_space<vmem>>, vector<72x128xbf16>,
    %c0_0 = arith.constant 0 : index
    %c0_1 = arith.constant 0 : index
    %c0_2 = arith.constant 0 : index
    %2 = vector.load %arg1[%c0_0, %c0_1, %c0_2] : memref<1x8x128xbf16, #tpu.memory_space<vmem>>, vector<1x8x128xbf16>
    %3 = vector.shape_cast %2 : vector<1x8x128xbf16> to vector<8x128xbf16>
    %c0_3 = arith.constant 0 : index
    %c0_4 = arith.constant 0 : index
    %4 = vector.load %arg2[%c0_3, %c0_4] : memref<128x896xbf16, #tpu.memory_space<vmem>>, vector<128x896xbf16>
    %cst_5 = arith.constant dense<0.000000e+00> : vector<8x896xf32>
    %5 = tpu.matmul %3, %4, %cst_5 {dimension_numbers = #tpu.dot_dimension_numbers<[1], [0], [0], [1], [0, 0, 1, 1], [], []>} : vector<8x128xbf16>, vector<128x896xbf16>, vector<8x896xf32> -> vector<8x896xf32>
    %6 = arith.truncf %5 : vector<8x896xf32> to vector<8x896xbf16>
    %c0_6 = arith.constant 0 : index
    %c0_7 = arith.constant 0 : index
    %7 = vector.load %arg11[%c0_6, %c0_7] : memref<8x896xbf16, #tpu.memory_space<vmem>>, vector<8x896xbf16>
    tpu.vector_store %arg11[%c0_6, %c0_7], %6 {strides = array<i32>} : memref<8x896xbf16, #tpu.memory_space<vmem>>, vector<8x896xbf16>,
    %c0_8 = arith.constant 0 : index
    %c0_9 = arith.constant 0 : index
    %8 = vector.load %arg11[%c0_8, %c0_9] : memref<8x896xbf16, #tpu.memory_space<vmem>>, vector<8x768xbf16>
    %c0_10 = arith.constant 0 : index
    %c0_11 = arith.constant 0 : index
    %9 = vector.load %arg14[%c0_10, %c0_11] : memref<72x896xbf16, #tpu.memory_space<vmem>>, vector<8x768xbf16>
    tpu.vector_store %arg14[%c0_10, %c0_11], %8 {strides = array<i32>} : memref<72x896xbf16, #tpu.memory_space<vmem>>, vector<8x768xbf16>,
    %c0_12 = arith.constant 0 : index
    %c1 = arith.constant 1 : index
    %10 = vector.load %arg11[%c0_12, %c1] : memref<8x896xbf16, #tpu.memory_space<vmem>>, vector<8x768xbf16>
    %c8 = arith.constant 8 : index
    %c0_13 = arith.constant 0 : index
    %11 = vector.load %arg14[%c8, %c0_13] : memref<72x896xbf16, #tpu.memory_space<vmem>>, vector<8x768xbf16>
    tpu.vector_store %arg14[%c8, %c0_13], %10 {strides = array<i32>} : memref<72x896xbf16, #tpu.memory_space<vmem>>, vector<8x768xbf16>,
    %c0_14 = arith.constant 0 : index
    %c2 = arith.constant 2 : index
    %12 = vector.load %arg11[%c0_14, %c2] : memref<8x896xbf16, #tpu.memory_space<vmem>>, vector<8x768xbf16>
    %c16 = arith.constant 16 : index
    %c0_15 = arith.constant 0 : index
    %13 = vector.load %arg14[%c16, %c0_15] : memref<72x896xbf16, #tpu.memory_space<vmem>>, vector<8x768xbf16>
    tpu.vector_store %arg14[%c16, %c0_15], %12 {strides = array<i32>} : memref<72x896xbf16, #tpu.memory_space<vmem>>, vector<8x768xbf16>,
    %c0_16 = arith.constant 0 : index
    %c18 = arith.constant 18 : index
    %14 = vector.load %arg11[%c0_16, %c18] : memref<8x896xbf16, #tpu.memory_space<vmem>>, vector<8x768xbf16>
    %c24 = arith.constant 24 : index
    %c0_17 = arith.constant 0 : index
    %15 = vector.load %arg14[%c24, %c0_17] : memref<72x896xbf16, #tpu.memory_space<vmem>>, vector<8x768xbf16>
    tpu.vector_store %arg14[%c24, %c0_17], %14 {strides = array<i32>} : memref<72x896xbf16, #tpu.memory_space<vmem>>, vector<8x768xbf16>,
    %c0_18 = arith.constant 0 : index
    %c19 = arith.constant 19 : index
    %16 = vector.load %arg11[%c0_18, %c19] : memref<8x896xbf16, #tpu.memory_space<vmem>>, vector<8x768xbf16>
    %c32 = arith.constant 32 : index
    %c0_19 = arith.constant 0 : index
    %17 = vector.load %arg14[%c32, %c0_19] : memref<72x896xbf16, #tpu.memory_space<vmem>>, vector<8x768xbf16>
    tpu.vector_store %arg14[%c32, %c0_19], %16 {strides = array<i32>} : memref<72x896xbf16, #tpu.memory_space<vmem>>, vector<8x768xbf16>,
    %c0_20 = arith.constant 0 : index
    %c20 = arith.constant 20 : index
    %18 = vector.load %arg11[%c0_20, %c20] : memref<8x896xbf16, #tpu.memory_space<vmem>>, vector<8x768xbf16>
    %c40 = arith.constant 40 : index
    %c0_21 = arith.constant 0 : index
    %19 = vector.load %arg14[%c40, %c0_21] : memref<72x896xbf16, #tpu.memory_space<vmem>>, vector<8x768xbf16>
    tpu.vector_store %arg14[%c40, %c0_21], %18 {strides = array<i32>} : memref<72x896xbf16, #tpu.memory_space<vmem>>, vector<8x768xbf16>,
    %c0_22 = arith.constant 0 : index
    %c36 = arith.constant 36 : index
    %20 = vector.load %arg11[%c0_22, %c36] : memref<8x896xbf16, #tpu.memory_space<vmem>>, vector<8x768xbf16>
    %c48 = arith.constant 48 : index
    %c0_23 = arith.constant 0 : index
    %21 = vector.load %arg14[%c48, %c0_23] : memref<72x896xbf16, #tpu.memory_space<vmem>>, vector<8x768xbf16>
    tpu.vector_store %arg14[%c48, %c0_23], %20 {strides = array<i32>} : memref<72x896xbf16, #tpu.memory_space<vmem>>, vector<8x768xbf16>,
    %c0_24 = arith.constant 0 : index
    %c37 = arith.constant 37 : index
    %22 = vector.load %arg11[%c0_24, %c37] : memref<8x896xbf16, #tpu.memory_space<vmem>>, vector<8x768xbf16>
    %c56 = arith.constant 56 : index
    %c0_25 = arith.constant 0 : index
    %23 = vector.load %arg14[%c56, %c0_25] : memref<72x896xbf16, #tpu.memory_space<vmem>>, vector<8x768xbf16>
    tpu.vector_store %arg14[%c56, %c0_25], %22 {strides = array<i32>} : memref<72x896xbf16, #tpu.memory_space<vmem>>, vector<8x768xbf16>,
    %c0_26 = arith.constant 0 : index
    %c38 = arith.constant 38 : index
    %24 = vector.load %arg11[%c0_26, %c38] : memref<8x896xbf16, #tpu.memory_space<vmem>>, vector<8x768xbf16>
    %c64 = arith.constant 64 : index
    %c0_27 = arith.constant 0 : index
    %25 = vector.load %arg14[%c64, %c0_27] : memref<72x896xbf16, #tpu.memory_space<vmem>>, vector<8x768xbf16>
    tpu.vector_store %arg14[%c64, %c0_27], %24 {strides = array<i32>} : memref<72x896xbf16, #tpu.memory_space<vmem>>, vector<8x768xbf16>,
    %c0_28 = arith.constant 0 : index
    %c0_29 = arith.constant 0 : index
    %26 = vector.load %arg4[%c0_28, %c0_29] : memref<4x72xbf16, #tpu.memory_space<vmem>>, vector<4x72xbf16>
    %c0_30 = arith.constant 0 : index
    %c0_31 = arith.constant 0 : index
    %27 = vector.load %arg14[%c0_30, %c0_31] : memref<72x896xbf16, #tpu.memory_space<vmem>>, vector<72x896xbf16>
    %cst_32 = arith.constant dense<0.000000e+00> : vector<4x896xf32>
    %28 = tpu.matmul %26, %27, %cst_32 {dimension_numbers = #tpu.dot_dimension_numbers<[1], [0], [0], [1], [0, 0, 1, 1], [], []>} : vector<4x72xbf16>, vector<72x896xbf16>, vector<4x896xf32> -> vector<4x896xf32>
    %c0_33 = arith.constant 0 : index
    %c0_34 = arith.constant 0 : index
    %29 = vector.load %arg5[%c0_33, %c0_34] : memref<4x1xf32, #tpu.memory_space<vmem>>, vector<4x1xf32>
    %30 = vector.broadcast %29 : vector<4x1xf32> to vector<4x896xf32>
    %31 = arith.addf %28, %30 : vector<4x896xf32>
    %32 = arith.truncf %31 : vector<4x896xf32> to vector<4x896xbf16>
    %c0_35 = arith.constant 0 : index
    %c0_36 = arith.constant 0 : index
    %33 = vector.load %arg12[%c0_35, %c0_36] : memref<4x896xbf16, #tpu.memory_space<vmem>>, vector<4x896xbf16>
    tpu.vector_store %arg12[%c0_35, %c0_36], %32 {strides = array<i32>} : memref<4x896xbf16, #tpu.memory_space<vmem>>, vector<4x896xbf16>,
    %c0_37 = arith.constant 0 : index
    %c0_38 = arith.constant 0 : index
    %34 = vector.load %arg12[%c0_37, %c0_38] : memref<4x896xbf16, #tpu.memory_space<vmem>>, vector<4x768xbf16>
    %c0_39 = arith.constant 0 : index
    %c0_40 = arith.constant 0 : index
    %35 = vector.load %arg14[%c0_39, %c0_40] : memref<72x896xbf16, #tpu.memory_space<vmem>>, vector<4x768xbf16>
    tpu.vector_store %arg14[%c0_39, %c0_40], %34 {strides = array<i32>} : memref<72x896xbf16, #tpu.memory_space<vmem>>, vector<4x768xbf16>,
    %c0_41 = arith.constant 0 : index
    %c0_42 = arith.constant 0 : index
    %c0_43 = arith.constant 0 : index
    %36 = vector.load %arg3[%c0_41, %c0_42, %c0_43] : memref<1x4x896xbf16, #tpu.memory_space<vmem>>, vector<1x4x768xbf16>
    %37 = vector.shape_cast %36 : vector<1x4x768xbf16> to vector<4x768xbf16>
    %c4 = arith.constant 4 : index
    %c0_44 = arith.constant 0 : index
    %38 = vector.load %arg14[%c4, %c0_44] : memref<72x896xbf16, #tpu.memory_space<vmem>>, vector<4x768xbf16>
    tpu.vector_store %arg14[%c4, %c0_44], %37 {strides = array<i32>} : memref<72x896xbf16, #tpu.memory_space<vmem>>, vector<4x768xbf16>,
    %c0_45 = arith.constant 0 : index
    %c1_46 = arith.constant 1 : index
    %39 = vector.load %arg12[%c0_45, %c1_46] : memref<4x896xbf16, #tpu.memory_space<vmem>>, vector<4x768xbf16>
    %c8_47 = arith.constant 8 : index
    %c0_48 = arith.constant 0 : index
    %40 = vector.load %arg14[%c8_47, %c0_48] : memref<72x896xbf16, #tpu.memory_space<vmem>>, vector<4x768xbf16>
    tpu.vector_store %arg14[%c8_47, %c0_48], %39 {strides = array<i32>} : memref<72x896xbf16, #tpu.memory_space<vmem>>, vector<4x768xbf16>,
    %c0_49 = arith.constant 0 : index
    %c0_50 = arith.constant 0 : index
    %c1_51 = arith.constant 1 : index
    %41 = vector.load %arg3[%c0_49, %c0_50, %c1_51] : memref<1x4x896xbf16, #tpu.memory_space<vmem>>, vector<1x4x768xbf16>
    %42 = vector.shape_cast %41 : vector<1x4x768xbf16> to vector<4x768xbf16>
    %c12 = arith.constant 12 : index
    %c0_52 = arith.constant 0 : index
    %43 = vector.load %arg14[%c12, %c0_52] : memref<72x896xbf16, #tpu.memory_space<vmem>>, vector<4x768xbf16>
    tpu.vector_store %arg14[%c12, %c0_52], %42 {strides = array<i32>} : memref<72x896xbf16, #tpu.memory_space<vmem>>, vector<4x768xbf16>,
    %c0_53 = arith.constant 0 : index
    %c2_54 = arith.constant 2 : index
    %44 = vector.load %arg12[%c0_53, %c2_54] : memref<4x896xbf16, #tpu.memory_space<vmem>>, vector<4x768xbf16>
    %c16_55 = arith.constant 16 : index
    %c0_56 = arith.constant 0 : index
    %45 = vector.load %arg14[%c16_55, %c0_56] : memref<72x896xbf16, #tpu.memory_space<vmem>>, vector<4x768xbf16>
    tpu.vector_store %arg14[%c16_55, %c0_56], %44 {strides = array<i32>} : memref<72x896xbf16, #tpu.memory_space<vmem>>, vector<4x768xbf16>,
    %c0_57 = arith.constant 0 : index
    %c0_58 = arith.constant 0 : index
    %c2_59 = arith.constant 2 : index
    %46 = vector.load %arg3[%c0_57, %c0_58, %c2_59] : memref<1x4x896xbf16, #tpu.memory_space<vmem>>, vector<1x4x768xbf16>
    %47 = vector.shape_cast %46 : vector<1x4x768xbf16> to vector<4x768xbf16>
    %c20_60 = arith.constant 20 : index
    %c0_61 = arith.constant 0 : index
    %48 = vector.load %arg14[%c20_60, %c0_61] : memref<72x896xbf16, #tpu.memory_space<vmem>>, vector<4x768xbf16>
    tpu.vector_store %arg14[%c20_60, %c0_61], %47 {strides = array<i32>} : memref<72x896xbf16, #tpu.memory_space<vmem>>, vector<4x768xbf16>,
    %c0_62 = arith.constant 0 : index
    %c18_63 = arith.constant 18 : index
    %49 = vector.load %arg12[%c0_62, %c18_63] : memref<4x896xbf16, #tpu.memory_space<vmem>>, vector<4x768xbf16>
    %c24_64 = arith.constant 24 : index
    %c0_65 = arith.constant 0 : index
    %50 = vector.load %arg14[%c24_64, %c0_65] : memref<72x896xbf16, #tpu.memory_space<vmem>>, vector<4x768xbf16>
    tpu.vector_store %arg14[%c24_64, %c0_65], %49 {strides = array<i32>} : memref<72x896xbf16, #tpu.memory_space<vmem>>, vector<4x768xbf16>,
    %c0_66 = arith.constant 0 : index
    %c0_67 = arith.constant 0 : index
    %c18_68 = arith.constant 18 : index
    %51 = vector.load %arg3[%c0_66, %c0_67, %c18_68] : memref<1x4x896xbf16, #tpu.memory_space<vmem>>, vector<1x4x768xbf16>
    %52 = vector.shape_cast %51 : vector<1x4x768xbf16> to vector<4x768xbf16>
    %c28 = arith.constant 28 : index
    %c0_69 = arith.constant 0 : index
    %53 = vector.load %arg14[%c28, %c0_69] : memref<72x896xbf16, #tpu.memory_space<vmem>>, vector<4x768xbf16>
    tpu.vector_store %arg14[%c28, %c0_69], %52 {strides = array<i32>} : memref<72x896xbf16, #tpu.memory_space<vmem>>, vector<4x768xbf16>,
    %c0_70 = arith.constant 0 : index
    %c19_71 = arith.constant 19 : index
    %54 = vector.load %arg12[%c0_70, %c19_71] : memref<4x896xbf16, #tpu.memory_space<vmem>>, vector<4x768xbf16>
    %c32_72 = arith.constant 32 : index
    %c0_73 = arith.constant 0 : index
    %55 = vector.load %arg14[%c32_72, %c0_73] : memref<72x896xbf16, #tpu.memory_space<vmem>>, vector<4x768xbf16>
    tpu.vector_store %arg14[%c32_72, %c0_73], %54 {strides = array<i32>} : memref<72x896xbf16, #tpu.memory_space<vmem>>, vector<4x768xbf16>,
    %c0_74 = arith.constant 0 : index
    %c0_75 = arith.constant 0 : index
    %c19_76 = arith.constant 19 : index
    %56 = vector.load %arg3[%c0_74, %c0_75, %c19_76] : memref<1x4x896xbf16, #tpu.memory_space<vmem>>, vector<1x4x768xbf16>
    %57 = vector.shape_cast %56 : vector<1x4x768xbf16> to vector<4x768xbf16>
    %c36_77 = arith.constant 36 : index
    %c0_78 = arith.constant 0 : index
    %58 = vector.load %arg14[%c36_77, %c0_78] : memref<72x896xbf16, #tpu.memory_space<vmem>>, vector<4x768xbf16>
    tpu.vector_store %arg14[%c36_77, %c0_78], %57 {strides = array<i32>} : memref<72x896xbf16, #tpu.memory_space<vmem>>, vector<4x768xbf16>,
    %c0_79 = arith.constant 0 : index
    %c20_80 = arith.constant 20 : index
    %59 = vector.load %arg12[%c0_79, %c20_80] : memref<4x896xbf16, #tpu.memory_space<vmem>>, vector<4x768xbf16>
    %c40_81 = arith.constant 40 : index
    %c0_82 = arith.constant 0 : index
    %60 = vector.load %arg14[%c40_81, %c0_82] : memref<72x896xbf16, #tpu.memory_space<vmem>>, vector<4x768xbf16>
    tpu.vector_store %arg14[%c40_81, %c0_82], %59 {strides = array<i32>} : memref<72x896xbf16, #tpu.memory_space<vmem>>, vector<4x768xbf16>,
    %c0_83 = arith.constant 0 : index
    %c0_84 = arith.constant 0 : index
    %c20_85 = arith.constant 20 : index
    %61 = vector.load %arg3[%c0_83, %c0_84, %c20_85] : memref<1x4x896xbf16, #tpu.memory_space<vmem>>, vector<1x4x768xbf16>
    %62 = vector.shape_cast %61 : vector<1x4x768xbf16> to vector<4x768xbf16>
    %c44 = arith.constant 44 : index
    %c0_86 = arith.constant 0 : index
    %63 = vector.load %arg14[%c44, %c0_86] : memref<72x896xbf16, #tpu.memory_space<vmem>>, vector<4x768xbf16>
    tpu.vector_store %arg14[%c44, %c0_86], %62 {strides = array<i32>} : memref<72x896xbf16, #tpu.memory_space<vmem>>, vector<4x768xbf16>,
    %c0_87 = arith.constant 0 : index
    %c36_88 = arith.constant 36 : index
    %64 = vector.load %arg12[%c0_87, %c36_88] : memref<4x896xbf16, #tpu.memory_space<vmem>>, vector<4x768xbf16>
    %c48_89 = arith.constant 48 : index
    %c0_90 = arith.constant 0 : index
    %65 = vector.load %arg14[%c48_89, %c0_90] : memref<72x896xbf16, #tpu.memory_space<vmem>>, vector<4x768xbf16>
    tpu.vector_store %arg14[%c48_89, %c0_90], %64 {strides = array<i32>} : memref<72x896xbf16, #tpu.memory_space<vmem>>, vector<4x768xbf16>,
    %c0_91 = arith.constant 0 : index
    %c0_92 = arith.constant 0 : index
    %c36_93 = arith.constant 36 : index
    %66 = vector.load %arg3[%c0_91, %c0_92, %c36_93] : memref<1x4x896xbf16, #tpu.memory_space<vmem>>, vector<1x4x768xbf16>
    %67 = vector.shape_cast %66 : vector<1x4x768xbf16> to vector<4x768xbf16>
    %c52 = arith.constant 52 : index
    %c0_94 = arith.constant 0 : index
    %68 = vector.load %arg14[%c52, %c0_94] : memref<72x896xbf16, #tpu.memory_space<vmem>>, vector<4x768xbf16>
    tpu.vector_store %arg14[%c52, %c0_94], %67 {strides = array<i32>} : memref<72x896xbf16, #tpu.memory_space<vmem>>, vector<4x768xbf16>,
    %c0_95 = arith.constant 0 : index
    %c37_96 = arith.constant 37 : index
    %69 = vector.load %arg12[%c0_95, %c37_96] : memref<4x896xbf16, #tpu.memory_space<vmem>>, vector<4x768xbf16>
    %c56_97 = arith.constant 56 : index
    %c0_98 = arith.constant 0 : index
    %70 = vector.load %arg14[%c56_97, %c0_98] : memref<72x896xbf16, #tpu.memory_space<vmem>>, vector<4x768xbf16>
    tpu.vector_store %arg14[%c56_97, %c0_98], %69 {strides = array<i32>} : memref<72x896xbf16, #tpu.memory_space<vmem>>, vector<4x768xbf16>,
    %c0_99 = arith.constant 0 : index
    %c0_100 = arith.constant 0 : index
    %c37_101 = arith.constant 37 : index
    %71 = vector.load %arg3[%c0_99, %c0_100, %c37_101] : memref<1x4x896xbf16, #tpu.memory_space<vmem>>, vector<1x4x768xbf16>
    %72 = vector.shape_cast %71 : vector<1x4x768xbf16> to vector<4x768xbf16>
    %c60 = arith.constant 60 : index
    %c0_102 = arith.constant 0 : index
    %73 = vector.load %arg14[%c60, %c0_102] : memref<72x896xbf16, #tpu.memory_space<vmem>>, vector<4x768xbf16>
    tpu.vector_store %arg14[%c60, %c0_102], %72 {strides = array<i32>} : memref<72x896xbf16, #tpu.memory_space<vmem>>, vector<4x768xbf16>,
    %c0_103 = arith.constant 0 : index
    %c38_104 = arith.constant 38 : index
    %74 = vector.load %arg12[%c0_103, %c38_104] : memref<4x896xbf16, #tpu.memory_space<vmem>>, vector<4x768xbf16>
    %c64_105 = arith.constant 64 : index
    %c0_106 = arith.constant 0 : index
    %75 = vector.load %arg14[%c64_105, %c0_106] : memref<72x896xbf16, #tpu.memory_space<vmem>>, vector<4x768xbf16>
    tpu.vector_store %arg14[%c64_105, %c0_106], %74 {strides = array<i32>} : memref<72x896xbf16, #tpu.memory_space<vmem>>, vector<4x768xbf16>,
    %c0_107 = arith.constant 0 : index
    %c0_108 = arith.constant 0 : index
    %c38_109 = arith.constant 38 : index
    %76 = vector.load %arg3[%c0_107, %c0_108, %c38_109] : memref<1x4x896xbf16, #tpu.memory_space<vmem>>, vector<1x4x768xbf16>
    %77 = vector.shape_cast %76 : vector<1x4x768xbf16> to vector<4x768xbf16>
    %c68 = arith.constant 68 : index
    %c0_110 = arith.constant 0 : index
    %78 = vector.load %arg14[%c68, %c0_110] : memref<72x896xbf16, #tpu.memory_space<vmem>>, vector<4x768xbf16>
    tpu.vector_store %arg14[%c68, %c0_110], %77 {strides = array<i32>} : memref<72x896xbf16, #tpu.memory_space<vmem>>, vector<4x768xbf16>,
    %c0_111 = arith.constant 0 : index
    %c0_112 = arith.constant 0 : index
    %79 = vector.load %arg6[%c0_111, %c0_112] : memref<4x72xbf16, #tpu.memory_space<vmem>>, vector<4x72xbf16>
    %c0_113 = arith.constant 0 : index
    %c0_114 = arith.constant 0 : index
    %80 = vector.load %arg14[%c0_113, %c0_114] : memref<72x896xbf16, #tpu.memory_space<vmem>>, vector<72x896xbf16>
    %cst_115 = arith.constant dense<0.000000e+00> : vector<4x896xf32>
    %81 = tpu.matmul %79, %80, %cst_115 {dimension_numbers = #tpu.dot_dimension_numbers<[1], [0], [0], [1], [0, 0, 1, 1], [], []>} : vector<4x72xbf16>, vector<72x896xbf16>, vector<4x896xf32> -> vector<4x896xf32>
    %c0_116 = arith.constant 0 : index
    %c0_117 = arith.constant 0 : index
    %82 = vector.load %arg7[%c0_116, %c0_117] : memref<4x1xf32, #tpu.memory_space<vmem>>, vector<4x1xf32>
    %83 = vector.broadcast %82 : vector<4x1xf32> to vector<4x896xf32>
    %84 = arith.addf %81, %83 : vector<4x896xf32>
    %cst_118 = arith.constant 0.000000e+00 : f32
    %85 = vector.broadcast %cst_118 : f32 to vector<4x896xf32>
    %86 = arith.maximumf %84, %85 : vector<4x896xf32>
    %87 = arith.truncf %86 : vector<4x896xf32> to vector<4x896xbf16>
    %c0_119 = arith.constant 0 : index
    %c0_120 = arith.constant 0 : index
    %88 = vector.load %arg13[%c0_119, %c0_120] : memref<4x896xbf16, #tpu.memory_space<vmem>>, vector<4x896xbf16>
    tpu.vector_store %arg13[%c0_119, %c0_120], %87 {strides = array<i32>} : memref<4x896xbf16, #tpu.memory_space<vmem>>, vector<4x896xbf16>,
    %c0_121 = arith.constant 0 : index
    %c0_122 = arith.constant 0 : index
    %89 = vector.load %arg13[%c0_121, %c0_122] : memref<4x896xbf16, #tpu.memory_space<vmem>>, vector<4x768xbf16>
    %c0_123 = arith.constant 0 : index
    %c0_124 = arith.constant 0 : index
    %90 = vector.load %arg14[%c0_123, %c0_124] : memref<72x896xbf16, #tpu.memory_space<vmem>>, vector<4x768xbf16>
    tpu.vector_store %arg14[%c0_123, %c0_124], %89 {strides = array<i32>} : memref<72x896xbf16, #tpu.memory_space<vmem>>, vector<4x768xbf16>,
    %c0_125 = arith.constant 0 : index
    %c1_126 = arith.constant 1 : index
    %91 = vector.load %arg13[%c0_125, %c1_126] : memref<4x896xbf16, #tpu.memory_space<vmem>>, vector<4x768xbf16>
    %c4_127 = arith.constant 4 : index
    %c0_128 = arith.constant 0 : index
    %92 = vector.load %arg14[%c4_127, %c0_128] : memref<72x896xbf16, #tpu.memory_space<vmem>>, vector<4x768xbf16>
    tpu.vector_store %arg14[%c4_127, %c0_128], %91 {strides = array<i32>} : memref<72x896xbf16, #tpu.memory_space<vmem>>, vector<4x768xbf16>,
    %c0_129 = arith.constant 0 : index
    %c2_130 = arith.constant 2 : index
    %93 = vector.load %arg13[%c0_129, %c2_130] : memref<4x896xbf16, #tpu.memory_space<vmem>>, vector<4x768xbf16>
    %c8_131 = arith.constant 8 : index
    %c0_132 = arith.constant 0 : index
    %94 = vector.load %arg14[%c8_131, %c0_132] : memref<72x896xbf16, #tpu.memory_space<vmem>>, vector<4x768xbf16>
    tpu.vector_store %arg14[%c8_131, %c0_132], %93 {strides = array<i32>} : memref<72x896xbf16, #tpu.memory_space<vmem>>, vector<4x768xbf16>,
    %c0_133 = arith.constant 0 : index
    %c18_134 = arith.constant 18 : index
    %95 = vector.load %arg13[%c0_133, %c18_134] : memref<4x896xbf16, #tpu.memory_space<vmem>>, vector<4x768xbf16>
    %c12_135 = arith.constant 12 : index
    %c0_136 = arith.constant 0 : index
    %96 = vector.load %arg14[%c12_135, %c0_136] : memref<72x896xbf16, #tpu.memory_space<vmem>>, vector<4x768xbf16>
    tpu.vector_store %arg14[%c12_135, %c0_136], %95 {strides = array<i32>} : memref<72x896xbf16, #tpu.memory_space<vmem>>, vector<4x768xbf16>,
    %c0_137 = arith.constant 0 : index
    %c19_138 = arith.constant 19 : index
    %97 = vector.load %arg13[%c0_137, %c19_138] : memref<4x896xbf16, #tpu.memory_space<vmem>>, vector<4x768xbf16>
    %c16_139 = arith.constant 16 : index
    %c0_140 = arith.constant 0 : index
    %98 = vector.load %arg14[%c16_139, %c0_140] : memref<72x896xbf16, #tpu.memory_space<vmem>>, vector<4x768xbf16>
    tpu.vector_store %arg14[%c16_139, %c0_140], %97 {strides = array<i32>} : memref<72x896xbf16, #tpu.memory_space<vmem>>, vector<4x768xbf16>,
    %c0_141 = arith.constant 0 : index
    %c20_142 = arith.constant 20 : index
    %99 = vector.load %arg13[%c0_141, %c20_142] : memref<4x896xbf16, #tpu.memory_space<vmem>>, vector<4x768xbf16>
    %c20_143 = arith.constant 20 : index
    %c0_144 = arith.constant 0 : index
    %100 = vector.load %arg14[%c20_143, %c0_144] : memref<72x896xbf16, #tpu.memory_space<vmem>>, vector<4x768xbf16>
    tpu.vector_store %arg14[%c20_143, %c0_144], %99 {strides = array<i32>} : memref<72x896xbf16, #tpu.memory_space<vmem>>, vector<4x768xbf16>,
    %c0_145 = arith.constant 0 : index
    %c36_146 = arith.constant 36 : index
    %101 = vector.load %arg13[%c0_145, %c36_146] : memref<4x896xbf16, #tpu.memory_space<vmem>>, vector<4x768xbf16>
    %c24_147 = arith.constant 24 : index
    %c0_148 = arith.constant 0 : index
    %102 = vector.load %arg14[%c24_147, %c0_148] : memref<72x896xbf16, #tpu.memory_space<vmem>>, vector<4x768xbf16>
    tpu.vector_store %arg14[%c24_147, %c0_148], %101 {strides = array<i32>} : memref<72x896xbf16, #tpu.memory_space<vmem>>, vector<4x768xbf16>,
    %c0_149 = arith.constant 0 : index
    %c37_150 = arith.constant 37 : index
    %103 = vector.load %arg13[%c0_149, %c37_150] : memref<4x896xbf16, #tpu.memory_space<vmem>>, vector<4x768xbf16>
    %c28_151 = arith.constant 28 : index
    %c0_152 = arith.constant 0 : index
    %104 = vector.load %arg14[%c28_151, %c0_152] : memref<72x896xbf16, #tpu.memory_space<vmem>>, vector<4x768xbf16>
    tpu.vector_store %arg14[%c28_151, %c0_152], %103 {strides = array<i32>} : memref<72x896xbf16, #tpu.memory_space<vmem>>, vector<4x768xbf16>,
    %c0_153 = arith.constant 0 : index
    %c38_154 = arith.constant 38 : index
    %105 = vector.load %arg13[%c0_153, %c38_154] : memref<4x896xbf16, #tpu.memory_space<vmem>>, vector<4x768xbf16>
    %c32_155 = arith.constant 32 : index
    %c0_156 = arith.constant 0 : index
    %106 = vector.load %arg14[%c32_155, %c0_156] : memref<72x896xbf16, #tpu.memory_space<vmem>>, vector<4x768xbf16>
    tpu.vector_store %arg14[%c32_155, %c0_156], %105 {strides = array<i32>} : memref<72x896xbf16, #tpu.memory_space<vmem>>, vector<4x768xbf16>,
    %c0_157 = arith.constant 0 : index
    %c0_158 = arith.constant 0 : index
    %107 = vector.load %arg8[%c0_157, %c0_158] : memref<4x36xbf16, #tpu.memory_space<vmem>>, vector<4x36xbf16>
    %c0_159 = arith.constant 0 : index
    %c0_160 = arith.constant 0 : index
    %108 = vector.load %arg14[%c0_159, %c0_160] : memref<72x896xbf16, #tpu.memory_space<vmem>>, vector<36x896xbf16>
    %cst_161 = arith.constant dense<0.000000e+00> : vector<4x896xf32>
    %109 = tpu.matmul %107, %108, %cst_161 {dimension_numbers = #tpu.dot_dimension_numbers<[1], [0], [0], [1], [0, 0, 1, 1], [], []>} : vector<4x36xbf16>, vector<36x896xbf16>, vector<4x896xf32> -> vector<4x896xf32>
    %c0_162 = arith.constant 0 : index
    %c0_163 = arith.constant 0 : index
    %110 = vector.load %arg9[%c0_162, %c0_163] : memref<4x1xf32, #tpu.memory_space<vmem>>, vector<4x1xf32>
    %111 = vector.broadcast %110 : vector<4x1xf32> to vector<4x896xf32>
    %112 = arith.addf %109, %111 : vector<4x896xf32>
    %cst_164 = arith.constant 0.000000e+00 : f32
    %113 = vector.broadcast %cst_164 : f32 to vector<4x896xf32>
    %114 = arith.maximumf %112, %113 : vector<4x896xf32>
    %c0_165 = arith.constant 0 : index
    %c0_166 = arith.constant 0 : index
    %c0_167 = arith.constant 0 : index
    %115 = vector.load %arg10[%c0_165, %c0_166, %c0_167] : memref<1x4x896xf32, #tpu.memory_space<vmem>>, vector<1x4x896xf32>
    %116 = vector.shape_cast %115 : vector<1x4x896xf32> to vector<4x896xf32>
    %117 = vector.shape_cast %114 : vector<4x896xf32> to vector<1x4x896xf32>
    tpu.vector_store %arg10[%c0_165, %c0_166, %c0_167], %117 {strides = array<i32>} : memref<1x4x896xf32, #tpu.memory_space<vmem>>, vector<1x4x896xf32>,
    return
  }
  func.func @transform_0(%arg0: i32) -> (i32, i32, i32) {
    %c0_i32 = arith.constant 0 : i32
    %c0_i32_0 = arith.constant 0 : i32
    %c0_i32_1 = arith.constant 0 : i32
    return %arg0, %c0_i32, %c0_i32_0 : i32, i32, i32
  }
  func.func @transform_1(%arg0: i32) -> (i32, i32) {
    %c0_i32 = arith.constant 0 : i32
    %c0_i32_0 = arith.constant 0 : i32
    %c0_i32_1 = arith.constant 0 : i32
    return %c0_i32, %c0_i32_0 : i32, i32
  }
  func.func @transform_2(%arg0: i32) -> (i32, i32, i32) {
    %c0_i32 = arith.constant 0 : i32
    %c0_i32_0 = arith.constant 0 : i32
    %c0_i32_1 = arith.constant 0 : i32
    return %arg0, %c0_i32, %c0_i32_0 : i32, i32, i32
  }
  func.func @transform_3(%arg0: i32) -> (i32, i32) {
    %c0_i32 = arith.constant 0 : i32
    %c0_i32_0 = arith.constant 0 : i32
    %c0_i32_1 = arith.constant 0 : i32
    return %c0_i32, %c0_i32_0 : i32, i32
  }
  func.func @transform_4(%arg0: i32) -> (i32, i32) {
    %c0_i32 = arith.constant 0 : i32
    %c0_i32_0 = arith.constant 0 : i32
    %c0_i32_1 = arith.constant 0 : i32
    return %c0_i32, %c0_i32_0 : i32, i32
  }
  func.func @transform_5(%arg0: i32) -> (i32, i32) {
    %c0_i32 = arith.constant 0 : i32
    %c0_i32_0 = arith.constant 0 : i32
    %c0_i32_1 = arith.constant 0 : i32
    return %c0_i32, %c0_i32_0 : i32, i32
  }
  func.func @transform_6(%arg0: i32) -> (i32, i32) {
    %c0_i32 = arith.constant 0 : i32
    %c0_i32_0 = arith.constant 0 : i32
    %c0_i32_1 = arith.constant 0 : i32
    return %c0_i32, %c0_i32_0 : i32, i32
  }
  func.func @transform_7(%arg0: i32) -> (i32, i32) {
    %c0_i32 = arith.constant 0 : i32
    %c0_i32_0 = arith.constant 0 : i32
    %c0_i32_1 = arith.constant 0 : i32
    return %c0_i32, %c0_i32_0 : i32, i32
  }
  func.func @transform_8(%arg0: i32) -> (i32, i32) {
    %c0_i32 = arith.constant 0 : i32
    %c0_i32_0 = arith.constant 0 : i32
    %c0_i32_1 = arith.constant 0 : i32
    return %c0_i32, %c0_i32_0 : i32, i32
  }
  func.func @transform_9(%arg0: i32) -> (i32, i32, i32) {
    %c0_i32 = arith.constant 0 : i32
    %c0_i32_0 = arith.constant 0 : i32
    %c0_i32_1 = arith.constant 0 : i32
    return %arg0, %c0_i32, %c0_i32_0 : i32, i32, i32
  }
}

</mosaic_0001>

<bundles_post_ra>
// kernel: tpu_custom_call.1
= control target key start
LH: loop header
LB: loop body
LE: loop exit
PB: predicated region body
PF: predicated region fallthrough
CT: control target
= control target key end

     0   :  { %14 = vsyncpa [#allocation7], 0  ;;  %s5250_s0 = inlined_call_operand.vmem [shape: bf16[1,8,128], index: 0, kind: input, shape index: {}]   ;;  %s5251_s1 = inlined_call_operand.hbm [shape: bf16[128,896], index: 1, kind: input, shape index: {}]   ;;  %s5252_s2 = inlined_call_operand.vmem [shape: bf16[1,4,896], index: 2, kind: input, shape index: {}]   ;;  %s5253_s3 = inlined_call_operand.vmem [shape: bf16[4,72], index: 3, kind: input, shape index: {}]   ;;  %s5254_s4 = inlined_call_operand.vmem [shape: f32[4,1], index: 4, kind: input, shape index: {}]   ;;  %s5255_s5 = inlined_call_operand.vmem [shape: bf16[4,72], index: 5, kind: input, shape index: {}]   ;;  %s5256_s6 = inlined_call_operand.vmem [shape: f32[4,1], index: 6, kind: input, shape index: {}]   ;;  %s5257_s7 = inlined_call_operand.vmem [shape: bf16[4,36], index: 7, kind: input, shape index: {}]   ;;  %s5258_s8 = inlined_call_operand.vmem [shape: f32[4,1], index: 8, kind: input, shape index: {}]   ;;  %s5259_s9 = inlined_call_operand.hbm [shape: f32[1,4,896], index: 9, kind: output, shape index: {}]  }
   0x1   :  { %15 = vsyncpa [#allocation8], 0  ;;  %s4133_s30 = smov [#allocation6]   ;;  %s4085_s13 = scalar_lea.hbm %s5251_s1, 7168 }
   0x2   :  { %s23_s10 = sshll.u32 %s4133_s30, 4  ;;  %p4086_p0 = scmp.ne.s32.totalorder %s5251_s1, %s4085_s13  ;;  %s24_s10 = int_to_ptr.vmem [resolvable:$true] %s23_s10 }
   0x3   :  { %p4089_p1 = scmp.lt.u32.totalorder %s4085_s13, %s5251_s1 }
   0x5   :  { %p4091_p2 = pnand %p4089_p1, %p4086_p0 }
   0x7   :  { %4094 = shalt.err (!%p4091_p2)
}
   0x8   :  { %s4095_s18 = scalar_lea.vmem %s24_s10, 7168  ;;  %p4100_p4 = scmp.lt.s32.totalorder %s24_s10, %s24_s10 }
   0x9   :  { %p4096_p3 = scmp.ne.s32.totalorder %s24_s10, %s4095_s18  ;;  %p4101_p5 = scmp.lt.s32.totalorder %s4095_s18, %s4095_s18 }
   0xb   :  { %p4102_p6 = por %p4101_p5, %p4100_p4 }
   0xd   :  { %p4103_p7 = pnand %p4102_p6, %p4096_p3 }
   0xf   :  { %4106 = shalt.err (!%p4103_p7)
}
  0x10   :  { %s4134_s19 = smov 448   ;;  %s4135_s20 = smov 28  }
  0x11   :  { %29 = dma.hbm_to_vmem [thread:$0]  %s5251_s1, 7168, %s24_s10, [#allocation7], %s4134_s19, %s4134_s19, %s4135_s20  }
  0x12   :  { %4129 = dma.done.wait [#allocation7], 7168  }
  0x13   :  { %4130 = vsyncadd [#allocation7], 4294960128  ;;  %v4136_v0 = vmov 0   ;;  %v3897_v1 = vld [vmem:[#allocation6 + $0x4] ss:$28 sps:$4 sm:$0xff]   ;;  %v4137_v39 = vmov 0.0  }
  0x14   :  { %442 = vmatprep.mubr.bf16.mxu0 %v4136_v0  ;;  %48 = vst [vmem:[#allocation5 + $0x18] sm:$0xf] %v4136_v0  ;;  %49 = vst [vmem:[#allocation5 + $0x34] sm:$0xf] %v4136_v0  ;;  %483 = vmatprep.mubr.bf16.mxu1 %v4136_v0  ;;  %v3899_v2 = vld [vmem:[#allocation6] ss:$28 sps:$4 sm:$0xff]  }
  0x15   :  { %50 = vst [vmem:[#allocation5 + $0x50] sm:$0xf] %v4136_v0  ;;  %51 = vst [vmem:[#allocation5 + $0x6c] sm:$0xf] %v4136_v0  ;;  %3895 = vset.pattern.permute.xlu0 %v4136_v0  ;;  %3896 = vset.pattern.permute.xlu1 %v4136_v0  ;;  %v3900_v3 = vld [vmem:[#allocation6 + $0x3c] ss:$28 sps:$4 sm:$0xff]  }
  0x16   :  { %52 = vst [vmem:[#allocation5 + $0x88] sm:$0xf] %v4136_v0  ;;  %53 = vst [vmem:[#allocation5 + $0xa4] sm:$0xf] %v4136_v0  ;;  %410 = vmatprep.subr.bf16.mxu0 %v3897_v1  ;;  %v3902_v4 = vld [vmem:[#allocation6 + $0xc] ss:$28 sps:$4 sm:$0xff]  }
  0x17   :  { %54 = vst [vmem:[#allocation5 + $0xc0] sm:$0xf] %v4136_v0  ;;  %55 = vst [vmem:[#allocation5 + $0xdc] sm:$0xf] %v4136_v0  ;;  %411 = vmatpush1.bf16.msra.mxu0 %v3899_v2  ;;  %v3904_v5 = vld [vmem:[#allocation6 + $0x38] ss:$28 sps:$4 sm:$0xff]   ;;  %451 = vmatprep.subr.bf16.mxu1 %v3902_v4 }
  0x18   :  { %56 = vst [vmem:[#allocation5 + $0xf8] sm:$0xf] %v4136_v0  ;;  %v3905_v6 = vld [vmem:[#allocation6 + $0x8] ss:$28 sps:$4 sm:$0xff]   ;;  %412 = vmatprep.subr.bf16.mxu0 %v3900_v3  ;;  %v3906_v7 = vld [vmem:[#allocation6 + $0x74] ss:$28 sps:$4 sm:$0xff]  }
  0x19   :  { %v3908_v8 = vld [vmem:[#allocation6 + $0x44] ss:$28 sps:$4 sm:$0xff]   ;;  %452 = vmatpush1.bf16.msra.mxu1 %v3905_v6  ;;  %v3910_v10 = vld [vmem:[#allocation6 + $0x70] ss:$28 sps:$4 sm:$0xff]   ;;  %v3914_v12 = vld [vmem:[#allocation6 + $0x7c] ss:$28 sps:$4 sm:$0xff]  }
  0x1a   :  { %v3911_v9 = vld [vmem:[#allocation6 + $0x40] ss:$28 sps:$4 sm:$0xff]   ;;  %453 = vmatprep.subr.bf16.mxu1 %v3908_v8  ;;  %v3912_v11 = vld [vmem:[#allocation6 + $0xac] ss:$28 sps:$4 sm:$0xff]   ;;  %v3917_v13 = vld [vmem:[#allocation6 + $0x78] ss:$28 sps:$4 sm:$0xff]  }
  0x1b   :  { %413 = vmatpush1.bf16.msra.mxu0 %v3904_v5  ;;  %v3916_v14 = vld [vmem:[#allocation6 + $0xa8] ss:$28 sps:$4 sm:$0xff]   ;;  %v3920_v15 = vld [vmem:[#allocation6 + $0xb4] ss:$28 sps:$4 sm:$0xff]   ;;  %v3922_v17 = vld [vmem:[#allocation6 + $0xe0] ss:$28 sps:$4 sm:$0xff]  }
  0x1c   :  { %414 = vmatprep.subr.bf16.mxu0 %v3906_v7  ;;  %v3918_v16 = vld [vmem:[#allocation6 + $0xe4] ss:$28 sps:$4 sm:$0xff]   ;;  %v3923_v18 = vld [vmem:[#allocation6 + $0xb0] ss:$28 sps:$4 sm:$0xff]   ;;  %v3924_v20 = vld [vmem:[#allocation6 + $0x11c] ss:$28 sps:$4 sm:$0xff]  }
  0x1d   :  { %454 = vmatpush1.bf16.msra.mxu1 %v3911_v9  ;;  %v3926_v19 = vld [vmem:[#allocation6 + $0xec] ss:$28 sps:$4 sm:$0xff]   ;;  %v3928_v22 = vld [vmem:[#allocation6 + $0x118] ss:$28 sps:$4 sm:$0xff]   ;;  %v3932_v23 = vld [vmem:[#allocation6 + $0x124] ss:$28 sps:$4 sm:$0xff]  }
  0x1e   :  { %455 = vmatprep.subr.bf16.mxu1 %v3914_v12  ;;  %v3929_v21 = vld [vmem:[#allocation6 + $0xe8] ss:$28 sps:$4 sm:$0xff]   ;;  %v3930_v24 = vld [vmem:[#allocation6 + $0x154] ss:$28 sps:$4 sm:$0xff]   ;;  %v3935_v26 = vld [vmem:[#allocation6 + $0x120] ss:$28 sps:$4 sm:$0xff]  }
  0x1f   :  { %415 = vmatpush1.bf16.msra.mxu0 %v3910_v10  ;;  %v3934_v25 = vld [vmem:[#allocation6 + $0x150] ss:$28 sps:$4 sm:$0xff]   ;;  %v3938_v27 = vld [vmem:[#allocation6 + $0x15c] ss:$28 sps:$4 sm:$0xff]   ;;  %v3940_v29 = vld [vmem:[#allocation6 + $0x188] ss:$28 sps:$4 sm:$0xff]  }
  0x20   :  { %416 = vmatprep.subr.bf16.mxu0 %v3912_v11  ;;  %v3936_v28 = vld [vmem:[#allocation6 + $0x18c] ss:$28 sps:$4 sm:$0xff]   ;;  %v3941_v30 = vld [vmem:[#allocation6 + $0x158] ss:$28 sps:$4 sm:$0xff]   ;;  %v3953_v40 = vld [vmem:[#allocation6 + $0x84] ss:$28 sps:$4 sm:$0xff]  }
  0x21   :  { %456 = vmatpush1.bf16.msra.mxu1 %v3917_v13  ;;  %v3942_v31 = vld [vmem:[#allocation6 + $0x194] ss:$28 sps:$4 sm:$0xff]   ;;  %v4227_v33 = vld [vmem:[%s5250_s0] sm:$0xf]  ;;  %v3948_v38 = vld [vmem:[#allocation6 + $0x48] ss:$28 sps:$4 sm:$0xff]  }
  0x22   :  { %457 = vmatprep.subr.bf16.mxu1 %v3920_v15  ;;  %v3946_v32 = vld [vmem:[#allocation6 + $0x14] ss:$28 sps:$4 sm:$0xff]   ;;  %v3950_v36 = vld [vmem:[#allocation6 + $0x4c] ss:$28 sps:$4 sm:$0xff]   ;;  %v3951_v41 = vld [vmem:[#allocation6 + $0x80] ss:$28 sps:$4 sm:$0xff]  }
  0x23   :  { %417 = vmatpush1.bf16.msra.mxu0 %v3916_v14  ;;  %v3947_v34 = vld [vmem:[#allocation6 + $0x190] ss:$28 sps:$4 sm:$0xff]   ;;  %v3960_v37 = vld [vmem:[#allocation6 + $0x18] ss:$28 sps:$4 sm:$0xff]   ;;  %vm4138_vm0 = vmmov 0   ;;  %s4139_s0 = smov 126  }
  0x24   :  { %418 = vmatprep.subr.bf16.mxu0 %v3918_v16  ;;  %v3944_v35 = vld [vmem:[#allocation6 + $0x10] ss:$28 sps:$4 sm:$0xff]   ;;  %v3956_v43 = vld [vmem:[#allocation6 + $0xbc] ss:$28 sps:$4 sm:$0xff]   ;;  %v3968_v44 = vld [vmem:[#allocation6 + $0x88] ss:$28 sps:$4 sm:$0xff]  }
  0x25   :  { %458 = vmatpush1.bf16.msra.mxu1 %v3923_v18  ;;  %v3964_v42 = vld [vmem:[#allocation6 + $0x50] ss:$28 sps:$4 sm:$0xff]   ;;  %v3954_v45 = vld [vmem:[#allocation6 + $0xb8] ss:$28 sps:$4 sm:$0xff]   ;;  %v3972_v47 = vld [vmem:[#allocation6 + $0xc0] ss:$28 sps:$4 sm:$0xff]  }
  0x26   :  { %459 = vmatprep.subr.bf16.mxu1 %v3926_v19  ;;  %v3959_v46 = vld [vmem:[#allocation6 + $0xf4] ss:$28 sps:$4 sm:$0xff]   ;;  %v3963_v49 = vld [vmem:[#allocation6 + $0x12c] ss:$28 sps:$4 sm:$0xff]   ;;  %v3967_v52 = vld [vmem:[#allocation6 + $0x164] ss:$28 sps:$4 sm:$0xff]  }
  0x27   :  { %419 = vmatpush1.bf16.msra.mxu0 %v3922_v17  ;;  %v3957_v48 = vld [vmem:[#allocation6 + $0xf0] ss:$28 sps:$4 sm:$0xff]   ;;  %v3973_v50 = vld [vmem:[#allocation6 + $0xf8] ss:$28 sps:$4 sm:$0xff]   ;;  %v3961_v51 = vld [vmem:[#allocation6 + $0x128] ss:$28 sps:$4 sm:$0xff]  }
  0x28   :  { %420 = vmatprep.subr.bf16.mxu0 %v3924_v20  ;;  %v3974_v53 = vld [vmem:[#allocation6 + $0x130] ss:$28 sps:$4 sm:$0xff]   ;;  %v3965_v54 = vld [vmem:[#allocation6 + $0x160] ss:$28 sps:$4 sm:$0xff]   ;;  %v3975_v56 = vld [vmem:[#allocation6 + $0x168] ss:$28 sps:$4 sm:$0xff]  }
  0x29   :  { %460 = vmatpush1.bf16.msra.mxu1 %v3929_v21  ;;  %v3971_v55 = vld [vmem:[#allocation6 + $0x19c] ss:$28 sps:$4 sm:$0xff]   ;;  %s4140_s24 = smov 127   ;;  %s4141_s25 = smov 110   ;;  %v4263_v6 = vld [vmem:[%s5252_s2] sm:$0xff]  ;;  %vm632_vm1 = vcmask 1043456  }
  0x2a   :  { %461 = vmatprep.subr.bf16.mxu1 %v3932_v23  ;;  %v3969_v57 = vld [vmem:[#allocation6 + $0x198] ss:$28 sps:$4 sm:$0xff]   ;;  %v3976_v58 = vld [vmem:[#allocation6 + $0x1a0] ss:$28 sps:$4 sm:$0xff]   ;;  %s4142_s28 = smov 109   ;;  %v4271_v7 = vcombine.low %v4263_v6, %v4263_v6  ;;  %s4143_s29 = smov 108  }
  0x2b   :  { %421 = vmatpush1.bf16.msra.mxu0 %v3928_v22  ;;  %s4144_s30 = smov 92   ;;  %s4145_s10 = smov 91   ;;  %v3978_v21 = vld [vmem:[%s5252_s2 + $0x8] ss:$0 sps:$4 sm:$0xff]   ;;  %vm634_vm2 = vcmask 1039360   ;;  %vm667_vm3 = vcmask 1031168  }
  0x2c   :  { %422 = vmatprep.subr.bf16.mxu0 %v3930_v24  ;;  %s4146_s11 = smov 90   ;;  %vm700_vm4 = vcmask 900096   ;;  %vm733_vm5 = vcmask 891904   ;;  %vm766_vm6 = vcmask 883712   ;;  %vm799_vm7 = vcmask 752640  }
  0x2d   :  { %462 = vmatpush1.bf16.msra.mxu1 %v3935_v26  ;;  %vm832_vm8 = vcmask 744448   ;;  %vm865_vm9 = vcmask 736256   ;;  %vm1082_vm10 = vcmask 588800   ;;  %vm3382_vm11 = vcmask 1041408  }
  0x2e   :  { %463 = vmatprep.subr.bf16.mxu1 %v3938_v27  ;;  %v914_v27 = vld [vmem:[%s5254_s4] sm:$0xf]  ;;  %vm3378_vm12 = vcmask 293888  }
  0x2f   :  { %423 = vmatpush1.bf16.msra.mxu0 %v3934_v25 }
  0x30   :  { %424 = vmatprep.subr.bf16.mxu0 %v3936_v28  ;;  %v1290_v28 = vlaneseq }
  0x31   :  { %464 = vmatpush1.bf16.msra.mxu1 %v3941_v30 }
  0x32   :  { %465 = vmatprep.subr.bf16.mxu1 %v3942_v31  ;;  %v1291_v31 = vshrl.u32 %v1290_v28, 7 }
  0x33   :  { %425 = vmatpush1.bf16.msra.mxu0 %v3940_v29  ;;  %v4147_v29 = vmov 1983009808  }
  0x34   :  { %492 = vmatprep.subr.bf16.mxu0 %v3946_v32  ;;  %v1288_v30 = vunpack.c.l.s4 %v4147_v29  ;;  %v4331_v32 = vld [vmem:[%s5252_s2 + $0x8] sm:$0x3f] }
  0x35   :  { %466 = vmatpush1.bf16.msra.mxu1 %v3947_v34 }
  0x36   :  { %443 = vmatmul.mubr.bf16.vlgmr.msra.gmra.mrb[0].mxu0 %v4227_v33  ;;  %3821 = vmatprep.subr.bf16.mxu1 %v4137_v39 }
  0x37   :  { %493 = vmatpush1.bf16.msra.mxu0 %v3944_v35  ;;  %524 = vmatprep.mubr.bf16.mxu0 %v4136_v0  ;;  %v1464_v35 = vcombine.low %v4331_v32, %v4331_v32 }
  0x38   :  { %494 = vmatprep.subr.bf16.mxu0 %v3950_v36  ;;  %484 = vmatmul.mubr.bf16.vlgmr.msra.gmra.mrb[0].mxu1 %v4227_v33 }
  0x39   :  { %3822 = vmatpush3.bf16.msra.mxu1 %v3960_v37  ;;  %3837 = vmatprep.mubr.msk.bf16.mxu1 %vm4138_vm0, %v4137_v39 }
  0x3a   :  { %3823 = vmatprep.subr.bf16.mxu1 %v4137_v39 }
  0x3b   :  { %495 = vmatpush1.bf16.msra.mxu0 %v3948_v38 }
  0x3c   :  { %496 = vmatprep.subr.bf16.mxu0 %v3953_v40  ;;  %v4354_v40 = vld [vmem:[%s5252_s2 + $0x8] sm:$0x3f] }
  0x3d   :  { %3824 = vmatpush3.bf16.msra.mxu1 %v3964_v42  ;;  %v4365_v42 = vld [vmem:[%s5252_s2 + $0x8] sm:$0x3f] }
  0x3e   :  { %3825 = vmatprep.subr.bf16.mxu1 %v4137_v39 }
  0x3f   :  { %497 = vmatpush1.bf16.msra.mxu0 %v3951_v41  ;;  %v1580_v41 = vcombine.low %v4354_v40, %v4354_v40 }
  0x40   :  { %498 = vmatprep.subr.bf16.mxu0 %v3956_v43 }
  0x41   :  { %3826 = vmatpush3.bf16.msra.mxu1 %v3968_v44  ;;  %v1696_v44 = vcombine.low %v4365_v42, %v4365_v42 }
  0x42   :  { %3827 = vmatprep.subr.bf16.mxu1 %v4137_v39 }
  0x43   :  { %499 = vmatpush1.bf16.msra.mxu0 %v3954_v45 }
  0x44   :  { %500 = vmatprep.subr.bf16.mxu0 %v3959_v46  ;;  %v4384_v46 = vld [vmem:[%s5252_s2 + $0x8] sm:$0x3f] }
  0x45   :  { %3828 = vmatpush3.bf16.msra.mxu1 %v3972_v47  ;;  %v1812_v47 = vcombine.low %v4384_v46, %v4384_v46 }
  0x46   :  { %3829 = vmatprep.subr.bf16.mxu1 %v4137_v39 }
  0x47   :  { %501 = vmatpush1.bf16.msra.mxu0 %v3957_v48  ;;  %v4393_v48 = vld [vmem:[%s5252_s2 + $0x8] sm:$0x3f] }
  0x48   :  { %502 = vmatprep.subr.bf16.mxu0 %v3963_v49 }
  0x49   :  { %3830 = vmatpush3.bf16.msra.mxu1 %v3973_v50  ;;  %v1928_v50 = vcombine.low %v4393_v48, %v4393_v48 }
  0x4a   :  { %3831 = vmatprep.subr.bf16.mxu1 %v4137_v39 }
  0x4b   :  { %503 = vmatpush1.bf16.msra.mxu0 %v3961_v51 }
  0x4c   :  { %504 = vmatprep.subr.bf16.mxu0 %v3967_v52  ;;  %v4406_v52 = vld [vmem:[%s5252_s2 + $0x8] sm:$0x3f] }
  0x4d   :  { %3832 = vmatpush3.bf16.msra.mxu1 %v3974_v53 }
  0x4e   :  { %3833 = vmatprep.subr.bf16.mxu1 %v4137_v39 }
  0x4f   :  { %505 = vmatpush1.bf16.msra.mxu0 %v3965_v54 }
  0x50   :  { %506 = vmatprep.subr.bf16.mxu0 %v3971_v55  ;;  %v2044_v55 = vcombine.low %v4406_v52, %v4406_v52 }
  0x51   :  { %3834 = vmatpush3.bf16.msra.mxu1 %v3975_v56  ;;  %v4415_v56 = vld [vmem:[%s5252_s2 + $0x8] sm:$0x3f] }
  0x52   :  { %3835 = vmatprep.subr.bf16.mxu1 %v4137_v39 }
  0x53   :  { %507 = vmatpush1.bf16.msra.mxu0 %v3969_v57 }
  0x55   :  { %3836 = vmatpush3.bf16.msra.mxu1 %v3976_v58 }
  0x56   :  { %525 = vmatmul.mubr.bf16.vlgmr.msra.gmra.mrb[4].mxu0 %v4227_v33 }
  0x57   :  { %1140 = vmatprep.mubr.bf16.mxu0 %v4136_v0 }
  0x58   :  { %3838 = vmatmul.mubr.bf16.vlgmr.msra.gmra.mrb[4].mxu1 %v4227_v33  ;;  %v1289_v33 = vunpack.c.0.s8 %v1288_v30 }
  0x59   :  { %1181 = vmatprep.mubr.bf16.mxu1 %v4136_v0 }
  0x5a   :  { %v4333_v34 = vsub.s32 %v1289_v33, %v1291_v31 }
  0x5c   :  { %v4339_v36 = vrot.slane %v4263_v6, %v4333_v34  ;;  %v1471_v37 = vrot.slane %v1464_v35, %v4333_v34  ;;  %v4346_v38 = vrot.slane %v4271_v7, %v4333_v34  ;;  %v1587_v43 = vrot.slane %v1580_v41, %v4333_v34 }
  0x5d   :  { %v1703_v45 = vrot.slane %v1696_v44, %v4333_v34  ;;  %v1819_v49 = vrot.slane %v1812_v47, %v4333_v34  ;;  %v1935_v51 = vrot.slane %v1928_v50, %v4333_v34  ;;  %v1478_v35 = vrot.slane %v4331_v32, %v4333_v34 }
  0x5e   :  { %v1594_v44 = vrot.slane %v4354_v40, %v4333_v34 }
 0x109   :  { %v444_v59 = vpop.f32.mrb[0].mxu0 }
 0x10a   :  { %v446_v60 = vpop.f32.mrb[1].mxu0 }
 0x10b   :  { %v4246_v61 = vpack.c.bf16 %v446_v60, %v444_v59  ;;  %v448_v62 = vpop.f32.mrb[2].mxu0  ;;  %v485_v1 = vpop.f32.mrb[0].mxu1  ;;  %v2160_v59 = vcombine.low %v4415_v56, %v4415_v56 }
 0x10c   :  { %v449_v63 = vpop.f32.mrb[3].mxu0  ;;  %v487_v2 = vpop.f32.mrb[1].mxu1 }
 0x10d   :  { %654 = vrot.lane.b32.xlu1 %v4246_v61, %s4139_s0  ;;  %620 = vrot.lane.b32.xlu0 %v4246_v61, %s4140_s24  ;;  %609 = vst [vmem:[#allocation5] sm:$0xff] %v4246_v61  ;;  %v4253_v3 = vpack.c.bf16 %v487_v2, %v485_v1  ;;  %v489_v4 = vpop.f32.mrb[2].mxu1  ;;  %v2051_v63 = vrot.slane %v2044_v55, %v4333_v34 }
 0x10e   :  { %v490_v5 = vpop.f32.mrb[3].mxu1  ;;  %3713 = vst.sshfl [vmem:[#allocation5] sm:$0xf0 pattern:$0x76325410] %v4271_v7 }
 0x10f   :  { %610 = vst [vmem:[#allocation5 + $0x8] sm:$0xff] %v4253_v3 }
 0x110   :  { %3714 = vst.sshfl [vmem:[#allocation5 + $0x8] sm:$0xf0 pattern:$0x76325410] %v4263_v6  ;;  %v2167_v6 = vrot.slane %v2160_v59, %v4333_v34 }
 0x111   :  { %687 = vrot.lane.b32.xlu1 %v4246_v61, %s4141_s25  ;;  %622 = vrot.lane.b32.xlu0 %v4253_v3, %s4140_s24 }
 0x115   :  { %720 = vrot.lane.b32.xlu1 %v4246_v61, %s4142_s28  ;;  %656 = vrot.lane.b32.xlu0 %v4253_v3, %s4139_s0 }
 0x119   :  { %753 = vrot.lane.b32.xlu1 %v4246_v61, %s4143_s29  ;;  %689 = vrot.lane.b32.xlu0 %v4253_v3, %s4141_s25 }
 0x11d   :  { %786 = vrot.lane.b32.xlu1 %v4246_v61, %s4144_s30  ;;  %722 = vrot.lane.b32.xlu0 %v4253_v3, %s4142_s28 }
 0x121   :  { %819 = vrot.lane.b32.xlu1 %v4246_v61, %s4145_s10  ;;  %755 = vrot.lane.b32.xlu0 %v4253_v3, %s4143_s29 }
 0x125   :  { %852 = vrot.lane.b32.xlu1 %v4246_v61, %s4146_s11  ;;  %788 = vrot.lane.b32.xlu0 %v4253_v3, %s4144_s30 }
 0x129   :  { %v526_v8 = vpop.f32.mrb[4].mxu0  ;;  %821 = vrot.lane.b32.xlu0 %v4253_v3, %s4145_s10 }
 0x12a   :  { %v528_v9 = vpop.f32.mrb[5].mxu0 }
 0x12b   :  { %v4293_v10 = vpack.c.bf16 %v528_v9, %v526_v8  ;;  %v530_v11 = vpop.f32.mrb[6].mxu0  ;;  %v567_v13 = vpop.f32.mrb[4].mxu1 }
 0x12c   :  { %v531_v12 = vpop.f32.mrb[7].mxu0  ;;  %v3795_v14 = vpack.c.bf16 %v567_v13, %v567_v13  ;;  %v3839_v15 = vpop.f32.mrb[5].mxu1 }
 0x12d   :  { %691 = vrot.lane.b32.xlu0 %v4293_v10, %s4141_s25  ;;  %624 = vrot.lane.b32.xlu1 %v4293_v10, %s4140_s24  ;;  %611 = vst [vmem:[#allocation5 + $0x10] sm:$0xff] %v4293_v10  ;;  %v570_v16 = vpop.f32.mrb[6].mxu1  ;;  %v4439_v12 = vld [vmem:[%s5252_s2 + $0x8] sm:$0x3f] }
 0x12e   :  { %605 = vst [vmem:[#allocation2 + $0x18] sm:$0xf] %v3795_v14  ;;  %v3840_v17 = vpop.f32.mrb[7].mxu1 }
 0x12f   :  { %3715 = vst.sshfl [vmem:[#allocation5 + $0x10] sm:$0xf0 pattern:$0x76325410] %v3978_v21 }
 0x131   :  { %757 = vrot.lane.b32.xlu0 %v4293_v10, %s4143_s29  ;;  %658 = vrot.lane.b32.xlu1 %v4293_v10, %s4139_s0 }
 0x135   :  { %823 = vrot.lane.b32.xlu0 %v4293_v10, %s4145_s10  ;;  %724 = vrot.lane.b32.xlu1 %v4293_v10, %s4142_s28  ;;  %v615_v18 = vld [vmem:[#allocation2 + $0x18] sm:$0xf] }
 0x136   :  { %v682_v19 = vld [vmem:[#allocation2 + $0x18] sm:$0xf] }
 0x137   :  { %v649_v20 = vld [vmem:[#allocation2 + $0x18] sm:$0xf] }
 0x138   :  { %v748_v22 = vld [vmem:[#allocation2 + $0x18] sm:$0xf] }
 0x139   :  { %854 = vrot.lane.b32.xlu0 %v4253_v3, %s4146_s11  ;;  %790 = vrot.lane.b32.xlu1 %v4293_v10, %s4144_s30  ;;  %v715_v23 = vld [vmem:[#allocation2 + $0x18] sm:$0xf] }
 0x13a   :  { %v814_v24 = vld [vmem:[#allocation2 + $0x18] sm:$0xf] }
 0x13b   :  { %v781_v25 = vld [vmem:[#allocation2 + $0x18] sm:$0xf] }
 0x13c   :  { %v847_v26 = vld [vmem:[#allocation2 + $0x18] sm:$0xf] }
 0x13d   :  { %626 = vrot.lane.b32.xlu0 %v615_v18, %s4140_s24  ;;  %856 = vrot.lane.b32.xlu1 %v4293_v10, %s4146_s11 }
 0x141   :  { %693 = vrot.lane.b32.xlu0 %v682_v19, %s4141_s25  ;;  %660 = vrot.lane.b32.xlu1 %v649_v20, %s4139_s0 }
 0x145   :  { %759 = vrot.lane.b32.xlu0 %v748_v22, %s4143_s29  ;;  %726 = vrot.lane.b32.xlu1 %v715_v23, %s4142_s28 }
 0x149   :  { %825 = vrot.lane.b32.xlu0 %v814_v24, %s4145_s10  ;;  %792 = vrot.lane.b32.xlu1 %v781_v25, %s4144_s30 }
 0x14d   :  { %858 = vrot.lane.b32.xlu1 %v847_v26, %s4146_s11  ;;  %917 = vperm.xlu0 %3895, %v914_v27  }
 0x151   :  { %1481 = vrot.lane.b32.xlu1 %v4339_v36, %s4140_s24  ;;  %1479 = vrot.lane.b32.xlu0 %v4346_v38, %s4140_s24 }
 0x155   :  { %1483 = vrot.lane.b32.xlu1 %v1471_v37, %s4140_s24  ;;  %1595 = vrot.lane.b32.xlu0 %v4346_v38, %s4139_s0 }
 0x159   :  { %1597 = vrot.lane.b32.xlu1 %v4339_v36, %s4139_s0  ;;  %1711 = vrot.lane.b32.xlu0 %v4346_v38, %s4141_s25 }
 0x15d   :  { %1713 = vrot.lane.b32.xlu1 %v4339_v36, %s4141_s25  ;;  %1827 = vrot.lane.b32.xlu0 %v4346_v38, %s4142_s28 }
 0x161   :  { %1599 = vrot.lane.b32.xlu1 %v1587_v43, %s4139_s0  ;;  %1943 = vrot.lane.b32.xlu0 %v4346_v38, %s4143_s29 }
 0x165   :  { %1715 = vrot.lane.b32.xlu1 %v1703_v45, %s4141_s25  ;;  %2059 = vrot.lane.b32.xlu0 %v4346_v38, %s4144_s30 }
 0x169   :  { %1829 = vrot.lane.b32.xlu1 %v4339_v36, %s4142_s28  ;;  %2175 = vrot.lane.b32.xlu0 %v4346_v38, %s4145_s10 }
 0x16d   :  { %1945 = vrot.lane.b32.xlu1 %v4339_v36, %s4143_s29  ;;  %2291 = vrot.lane.b32.xlu0 %v4346_v38, %s4146_s11 }
 0x171   :  { %1831 = vrot.lane.b32.xlu1 %v1819_v49, %s4142_s28 }
 0x175   :  { %1947 = vrot.lane.b32.xlu1 %v1935_v51, %s4143_s29 }
 0x179   :  { %2061 = vrot.lane.b32.xlu1 %v4339_v36, %s4144_s30 }
 0x17d   :  { %2177 = vrot.lane.b32.xlu1 %v4339_v36, %s4145_s10 }
 0x17f   :  { %v655_v53 = vpop.permute.xlu1 %654  ;;  %v621_v54 = vpop.permute.xlu0 %620 }
 0x180   :  { %v628_v60 = vrot.slane %v621_v54, 4  ;;  %v662_v7 = vrot.slane %v655_v53, 4 }
 0x181   :  { %2063 = vrot.lane.b32.xlu1 %v2051_v63, %s4144_s30 }
 0x183   :  { %v688_v57 = vpop.permute.xlu1 %687  ;;  %v4417_v58 = vpop.permute.xlu0 %622 }
 0x184   :  { %v629_v62 = vrot.slane %v4417_v58, 4  ;;  %v695_v17 = vrot.slane %v688_v57, 4 }
 0x185   :  { %2179 = vrot.lane.b32.xlu1 %v2167_v6, %s4145_s10 }
 0x186   :  { %v633_v1 = vsel %vm632_vm1, %v628_v60, %v629_v62 }
 0x187   :  { %v635_v2 = vsel %vm634_vm2, %v621_v54, %v633_v1  ;;  %v721_v4 = vpop.permute.xlu1 %720  ;;  %v4429_v5 = vpop.permute.xlu0 %656 }
 0x188   :  { %643 = vst [vmem:[#allocation5 + $0x1c] sm:$0xff] %v635_v2  ;;  %v663_v8 = vrot.slane %v4429_v5, 4  ;;  %v3666_v9 = vcombine.high %v4246_v61, %v635_v2  ;;  %v3665_v11 = vcombine.low %v4246_v61, %v635_v2  ;;  %v2276_v61 = vcombine.low %v4439_v12, %v4439_v12 }
 0x189   :  { %v728_v24 = vrot.slane %v721_v4, 4  ;;  %2293 = vrot.lane.b32.xlu1 %v4339_v36, %s4146_s11 }
 0x18a   :  { %v666_v13 = vsel %vm632_vm1, %v662_v7, %v663_v8  ;;  %1108 = vmatprep.subr.bf16.mxu0 %v3666_v9  ;;  %v2283_v23 = vrot.slane %v2276_v61, %v4333_v34 }
 0x18b   :  { %v668_v14 = vsel %vm667_vm3, %v655_v53, %v666_v13  ;;  %v754_v15 = vpop.permute.xlu1 %753  ;;  %v4445_v16 = vpop.permute.xlu0 %689  ;;  %1109 = vmatpush1.bf16.msra.mxu0 %v3665_v11 }
 0x18c   :  { %676 = vst [vmem:[#allocation5 + $0x38] sm:$0xff] %v668_v14  ;;  %v696_v18 = vrot.slane %v4445_v16, 4  ;;  %v761_v31 = vrot.slane %v754_v15, 4 }
 0x18d   :  { %2295 = vrot.lane.b32.xlu1 %v2283_v23, %s4146_s11 }
 0x18e   :  { %v699_v19 = vsel %vm632_vm1, %v695_v17, %v696_v18 }
 0x18f   :  { %v701_v20 = vsel %vm700_vm4, %v688_v57, %v699_v19  ;;  %v787_v21 = vpop.permute.xlu1 %786  ;;  %v4453_v22 = vpop.permute.xlu0 %722  ;;  %v1710_v57 = vrot.slane %v4365_v42, %v4333_v34 }
 0x190   :  { %709 = vst [vmem:[#allocation5 + $0x54] sm:$0xff] %v701_v20  ;;  %v729_v25 = vrot.slane %v4453_v22, 4  ;;  %v3673_v26 = vcombine.high %v668_v14, %v701_v20  ;;  %v3672_v27 = vcombine.low %v668_v14, %v701_v20  ;;  %v794_v45 = vrot.slane %v787_v21, 4 }
 0x191   :  { %1485 = vrot.lane.b32.xlu1 %v1478_v35, %s4140_s24 }
 0x192   :  { %v732_v28 = vsel %vm632_vm1, %v728_v24, %v729_v25  ;;  %1110 = vmatprep.subr.bf16.mxu0 %v3673_v26 }
 0x193   :  { %v734_v29 = vsel %vm733_vm5, %v721_v4, %v732_v28  ;;  %v756_v30 = vpop.permute.xlu0 %755  ;;  %1111 = vmatpush1.bf16.msra.mxu0 %v3672_v27  ;;  %v820_v37 = vpop.permute.xlu1 %819 }
 0x194   :  { %742 = vst [vmem:[#allocation5 + $0x70] sm:$0xff] %v734_v29  ;;  %v762_v33 = vrot.slane %v756_v30, 4  ;;  %v827_v40 = vrot.slane %v820_v37, 4 }
 0x195   :  { %1601 = vrot.lane.b32.xlu1 %v1594_v44, %s4139_s0 }
 0x196   :  { %v765_v36 = vsel %vm632_vm1, %v761_v31, %v762_v33 }
 0x197   :  { %v767_v41 = vsel %vm766_vm6, %v754_v15, %v765_v36  ;;  %v4468_v43 = vpop.permute.xlu0 %788  ;;  %v4477_v51 = vpop.permute.xlu1 %852 }
 0x198   :  { %775 = vst [vmem:[#allocation5 + $0x8c] sm:$0xff] %v767_v41  ;;  %v795_v47 = vrot.slane %v4468_v43, 4  ;;  %v3680_v49 = vcombine.high %v734_v29, %v767_v41  ;;  %v3679_v50 = vcombine.low %v734_v29, %v767_v41  ;;  %v860_v28 = vrot.slane %v4477_v51, 4 }
 0x199   :  { %1717 = vrot.lane.b32.xlu1 %v1710_v57, %s4141_s25 }
 0x19a   :  { %v798_v32 = vsel %vm632_vm1, %v794_v45, %v795_v47  ;;  %1112 = vmatprep.subr.bf16.mxu0 %v3680_v49 }
 0x19b   :  { %v800_v53 = vsel %vm799_vm7, %v787_v21, %v798_v32  ;;  %v822_v54 = vpop.permute.xlu0 %821  ;;  %1113 = vmatpush1.bf16.msra.mxu0 %v3679_v50 }
 0x19c   :  { %808 = vst [vmem:[#allocation5 + $0xa8] sm:$0xff] %v800_v53  ;;  %v828_v55 = vrot.slane %v822_v54, 4 }
 0x19e   :  { %v831_v59 = vsel %vm632_vm1, %v827_v40, %v828_v55 }
 0x19f   :  { %v833_v60 = vsel %vm832_vm8, %v820_v37, %v831_v59  ;;  %v4485_v63 = vpop.permute.xlu0 %691  ;;  %v4487_v1 = vpop.permute.xlu1 %624 }
 0x1a0   :  { %841 = vst [vmem:[#allocation5 + $0xc4] sm:$0xff] %v833_v60  ;;  %v697_v2 = vrot.slane %v4485_v63, 4  ;;  %v630_v4 = vrot.slane %v4487_v1, 4  ;;  %v3687_v6 = vcombine.high %v800_v53, %v833_v60  ;;  %v3686_v7 = vcombine.low %v800_v53, %v833_v60 }
 0x1a2   :  { %v702_v42 = vsel %vm632_vm1, %v696_v18, %v697_v2  ;;  %v636_v9 = vsel %vm632_vm1, %v629_v62, %v630_v4  ;;  %1114 = vmatprep.subr.bf16.mxu0 %v3687_v6 }
 0x1a3   :  { %v703_v11 = vsel %vm700_vm4, %v4445_v16, %v702_v42  ;;  %v637_v13 = vsel %vm634_vm2, %v4417_v58, %v636_v9  ;;  %v4504_v14 = vpop.permute.xlu0 %757  ;;  %v4506_v15 = vpop.permute.xlu1 %658  ;;  %1115 = vmatpush1.bf16.msra.mxu0 %v3686_v7 }
 0x1a4   :  { %710 = vst [vmem:[#allocation5 + $0x5c] sm:$0xff] %v703_v11  ;;  %644 = vst [vmem:[#allocation5 + $0x24] sm:$0xff] %v637_v13  ;;  %v763_v61 = vrot.slane %v4504_v14, 4  ;;  %v664_v17 = vrot.slane %v4506_v15, 4  ;;  %v3668_v62 = vcombine.high %v4253_v3, %v637_v13  ;;  %v3667_v18 = vcombine.low %v4253_v3, %v637_v13 }
 0x1a6   :  { %v768_v16 = vsel %vm632_vm1, %v762_v33, %v763_v61  ;;  %v669_v58 = vsel %vm632_vm1, %v663_v8, %v664_v17  ;;  %1149 = vmatprep.subr.bf16.mxu1 %v3668_v62 }
 0x1a7   :  { %v769_v19 = vsel %vm766_vm6, %v756_v30, %v768_v16  ;;  %v670_v20 = vsel %vm667_vm3, %v4429_v5, %v669_v58  ;;  %v4523_v21 = vpop.permute.xlu0 %823  ;;  %v4525_v23 = vpop.permute.xlu1 %724  ;;  %1150 = vmatpush1.bf16.msra.mxu1 %v3667_v18 }
 0x1a8   :  { %776 = vst [vmem:[#allocation5 + $0x94] sm:$0xff] %v769_v19  ;;  %677 = vst [vmem:[#allocation5 + $0x40] sm:$0xff] %v670_v20  ;;  %v829_v3 = vrot.slane %v4523_v21, 4  ;;  %v730_v24 = vrot.slane %v4525_v23, 4  ;;  %v3675_v26 = vcombine.high %v670_v20, %v703_v11  ;;  %v3674_v27 = vcombine.low %v670_v20, %v703_v11 }
 0x1aa   :  { %v834_v8 = vsel %vm632_vm1, %v828_v55, %v829_v3  ;;  %v735_v5 = vsel %vm632_vm1, %v729_v25, %v730_v24  ;;  %1151 = vmatprep.subr.bf16.mxu1 %v3675_v26 }
 0x1ab   :  { %v835_v29 = vsel %vm832_vm8, %v822_v54, %v834_v8  ;;  %v736_v30 = vsel %vm733_vm5, %v4453_v22, %v735_v5  ;;  %v855_v31 = vpop.permute.xlu0 %854  ;;  %v4541_v33 = vpop.permute.xlu1 %790  ;;  %1152 = vmatpush1.bf16.msra.mxu1 %v3674_v27  ;;  %v3979_v5 = vld [vmem:[#allocation5 + $0x18] ss:$28 sps:$4 sm:$0xff]  }
 0x1ac   :  { %842 = vst [vmem:[#allocation5 + $0xcc] sm:$0xff] %v835_v29  ;;  %743 = vst [vmem:[#allocation5 + $0x78] sm:$0xff] %v736_v30  ;;  %v861_v35 = vrot.slane %v855_v31, 4  ;;  %v796_v37 = vrot.slane %v4541_v33, 4  ;;  %v3682_v36 = vcombine.high %v736_v30, %v769_v19  ;;  %v3681_v25 = vcombine.low %v736_v30, %v769_v19 }
 0x1ae   :  { %v864_v41 = vsel %vm632_vm1, %v860_v28, %v861_v35  ;;  %v801_v22 = vsel %vm632_vm1, %v795_v47, %v796_v37  ;;  %1153 = vmatprep.subr.bf16.mxu1 %v3682_v36 }
 0x1af   :  { %v866_v44 = vsel %vm865_vm9, %v4477_v51, %v864_v41  ;;  %v802_v45 = vsel %vm799_vm7, %v4468_v43, %v801_v22  ;;  %v627_v49 = vpop.permute.xlu0 %626  ;;  %v4554_v50 = vpop.permute.xlu1 %856  ;;  %1154 = vmatpush1.bf16.msra.mxu1 %v3681_v25  ;;  %v3980_v25 = vld [vmem:[#allocation5 + $0x50] ss:$28 sps:$4 sm:$0xff]  }
 0x1b0   :  { %874 = vst [vmem:[#allocation5 + $0xe0] sm:$0xff] %v866_v44  ;;  %809 = vst [vmem:[#allocation5 + $0xb0] sm:$0xff] %v802_v45  ;;  %v631_v32 = vrot.slane %v627_v49, 4  ;;  %v862_v53 = vrot.slane %v4554_v50, 4  ;;  %v3694_v54 = vcombine.high %v866_v44, %v866_v44  ;;  %v3689_v40 = vcombine.high %v802_v45, %v835_v29 }
 0x1b1   :  { %v3693_v55 = vcombine.low %v866_v44, %v866_v44  ;;  %v3688_v47 = vcombine.low %v802_v45, %v835_v29 }
 0x1b2   :  { %v638_v51 = vsel %vm632_vm1, %v630_v4, %v631_v32  ;;  %v867_v43 = vsel %vm632_vm1, %v861_v35, %v862_v53  ;;  %3700 = vmatprep.subr.msk.bf16.mxu0 %vm632_vm1, %v3694_v54  ;;  %1155 = vmatprep.subr.bf16.mxu1 %v3689_v40  ;;  %v3982_v40 = vld [vmem:[#allocation5 + $0xc0] ss:$28 sps:$4 sm:$0xff]  }
 0x1b3   :  { %v639_v57 = vsel %vm634_vm2, %v4487_v1, %v638_v51  ;;  %v868_v59 = vsel %vm865_vm9, %v855_v31, %v867_v43  ;;  %v694_v60 = vpop.permute.xlu0 %693  ;;  %v661_v6 = vpop.permute.xlu1 %660  ;;  %v1088_v7 = vsel %vm632_vm1, %v3693_v55, 0  ;;  %1156 = vmatpush1.bf16.msra.mxu1 %v3688_v47  ;;  %v4572_v1 = vld [vmem:[%s5253_s3] sm:$0x3]  ;;  %v3983_v55 = vld [vmem:[#allocation5 + $0xf8] ss:$0 sps:$4 sm:$0xff]  }
 0x1b4   :  { %645 = vst [vmem:[#allocation5 + $0x2c] sm:$0xff] %v639_v57  ;;  %875 = vst [vmem:[#allocation5 + $0xe8] sm:$0xff] %v868_v59  ;;  %v698_v4 = vrot.slane %v694_v60, 4  ;;  %v665_v42 = vrot.slane %v661_v6, 4  ;;  %1117 = vmatpush1.bf16.msra.mxu0 %v1088_v7  ;;  %v3696_v9 = vcombine.high %v868_v59, %v868_v59  ;;  %v3670_v11 = vcombine.high %v4293_v10, %v639_v57 }
 0x1b5   :  { %v3695_v13 = vcombine.low %v868_v59, %v868_v59  ;;  %v3669_v62 = vcombine.low %v4293_v10, %v639_v57 }
 0x1b6   :  { %v704_v18 = vsel %vm632_vm1, %v697_v2, %v698_v4  ;;  %v671_v16 = vsel %vm632_vm1, %v664_v17, %v665_v42  ;;  %3702 = vmatprep.subr.msk.bf16.mxu1 %vm632_vm1, %v3696_v9  ;;  %1190 = vmatprep.subr.bf16.mxu0 %v3670_v11 }
 0x1b7   :  { %v705_v58 = vsel %vm700_vm4, %v4485_v63, %v704_v18  ;;  %v672_v19 = vsel %vm667_vm3, %v4506_v15, %v671_v16  ;;  %v760_v20 = vpop.permute.xlu0 %759  ;;  %v727_v26 = vpop.permute.xlu1 %726  ;;  %3701 = vmatmul.mubr.msk.bf16.vlgmr.msra.gmra.mrb[8].mxu0 %vm1082_vm10, %v4572_v1  ;;  %v1094_v10 = vsel %vm632_vm1, %v3695_v13, 0 }
 0x1b8   :  { %711 = vst [vmem:[#allocation5 + $0x64] sm:$0xff] %v705_v58  ;;  %678 = vst [vmem:[#allocation5 + $0x48] sm:$0xff] %v672_v19  ;;  %v764_v2 = vrot.slane %v760_v20, 4  ;;  %v731_v17 = vrot.slane %v727_v26, 4  ;;  %1158 = vmatpush1.bf16.msra.mxu1 %v1094_v10  ;;  %1191 = vmatpush1.bf16.msra.mxu0 %v3669_v62  ;;  %v3677_v27 = vcombine.high %v672_v19, %v705_v58 }
 0x1b9   :  { %v3676_v8 = vcombine.low %v672_v19, %v705_v58  ;;  %3841 = vmatprep.subr.bf16.mxu1 %v4137_v39  ;;  %1222 = vmatprep.mubr.bf16.mxu0 %v4136_v0 }
 0x1ba   :  { %v770_v63 = vsel %vm632_vm1, %v763_v61, %v764_v2  ;;  %v737_v15 = vsel %vm632_vm1, %v730_v24, %v731_v17  ;;  %1192 = vmatprep.subr.bf16.mxu0 %v3677_v27 }
 0x1bb   :  { %v771_v28 = vsel %vm766_vm6, %v4504_v14, %v770_v63  ;;  %v738_v29 = vsel %vm733_vm5, %v4525_v23, %v737_v15  ;;  %v826_v30 = vpop.permute.xlu0 %825  ;;  %v793_v31 = vpop.permute.xlu1 %792  ;;  %3703 = vmatmul.mubr.msk.bf16.vlgmr.msra.gmra.mrb[8].mxu1 %vm1082_vm10, %v4572_v1 }
 0x1bc   :  { %777 = vst [vmem:[#allocation5 + $0x9c] sm:$0xff] %v771_v28  ;;  %744 = vst [vmem:[#allocation5 + $0x80] sm:$0xff] %v738_v29  ;;  %v830_v35 = vrot.slane %v826_v30, 4  ;;  %v797_v61 = vrot.slane %v793_v31, 4  ;;  %1193 = vmatpush1.bf16.msra.mxu0 %v3676_v8  ;;  %3842 = vmatpush3.bf16.msra.mxu1 %v3979_v5  ;;  %v3684_v36 = vcombine.high %v738_v29, %v771_v28 }
 0x1bd   :  { %v3683_v24 = vcombine.low %v738_v29, %v771_v28  ;;  %3843 = vmatprep.subr.bf16.mxu1 %v4137_v39  ;;  %3851 = vmatprep.mubr.msk.bf16.mxu1 %vm4138_vm0, %v4137_v39 }
 0x1be   :  { %v836_v14 = vsel %vm632_vm1, %v829_v3, %v830_v35  ;;  %v803_v23 = vsel %vm632_vm1, %v796_v37, %v797_v61  ;;  %1194 = vmatprep.subr.bf16.mxu0 %v3684_v36  ;;  %v3981_v3 = vld [vmem:[#allocation5 + $0x88] ss:$28 sps:$4 sm:$0xff]  }
 0x1bf   :  { %v837_v41 = vsel %vm832_vm8, %v4523_v21, %v836_v14  ;;  %v804_v22 = vsel %vm799_vm7, %v4541_v33, %v803_v23  ;;  %v859_v44 = vpop.permute.xlu1 %858 }
 0x1c0   :  { %843 = vst [vmem:[#allocation5 + $0xd4] sm:$0xff] %v837_v41  ;;  %810 = vst [vmem:[#allocation5 + $0xb8] sm:$0xff] %v804_v22  ;;  %v863_v45 = vrot.slane %v859_v44, 4  ;;  %1195 = vmatpush1.bf16.msra.mxu0 %v3683_v24  ;;  %3844 = vmatpush3.bf16.msra.mxu1 %v3980_v25  ;;  %v3691_v49 = vcombine.high %v804_v22, %v837_v41  ;;  %v3690_v32 = vcombine.low %v804_v22, %v837_v41 }
 0x1c1   :  { %3845 = vmatprep.subr.bf16.mxu1 %v4137_v39 }
 0x1c2   :  { %v869_v37 = vsel %vm632_vm1, %v862_v53, %v863_v45  ;;  %1196 = vmatprep.subr.bf16.mxu0 %v3691_v49  ;;  %v1106_v53 = vsel %vm632_vm1, %v3983_v55, 0 }
 0x1c3   :  { %v870_v21 = vsel %vm865_vm9, %v4554_v50, %v869_v37  ;;  %v1482_v50 = vpop.permute.xlu1 %1481 }
 0x1c4   :  { %876 = vst [vmem:[#allocation5 + $0xf0] sm:$0xff] %v870_v21  ;;  %1197 = vmatpush1.bf16.msra.mxu0 %v3690_v32  ;;  %3846 = vmatpush3.bf16.msra.mxu1 %v3981_v3  ;;  %v3698_v33 = vcombine.high %v870_v21, %v870_v21  ;;  %v3697_v54 = vcombine.low %v870_v21, %v870_v21  ;;  %v1488_v59 = vrot.slane %v1482_v50, 4 }
 0x1c5   :  { %3847 = vmatprep.subr.bf16.mxu1 %v4137_v39 }
 0x1c6   :  { %3704 = vmatprep.subr.msk.bf16.mxu0 %vm632_vm1, %v3698_v33  ;;  %v1100_v47 = vsel %vm632_vm1, %v3697_v54, 0 }
 0x1c7   :  { %v4639_v51 = vpop.permute.xlu1 %1483 }
 0x1c8   :  { %1199 = vmatpush1.bf16.msra.mxu0 %v1100_v47  ;;  %3848 = vmatpush3.bf16.msra.mxu1 %v3982_v40  ;;  %v1489_v6 = vrot.slane %v4639_v51, 4 }
 0x1c9   :  { %3849 = vmatprep.subr.bf16.mxu1 %v4137_v39 }
 0x1ca   :  { %v1493_v38 = vsel %vm632_vm1, %v1488_v59, %v1489_v6 }
 0x1cb   :  { %3705 = vmatmul.mubr.msk.bf16.vlgmr.msra.gmra.mrb[12].mxu0 %vm1082_vm10, %v4572_v1  ;;  %v4641_v43 = vpop.permute.xlu1 %1597 }
 0x1cc   :  { %3850 = vmatpush3.bf16.msra.mxu1 %v1106_v53  ;;  %2576 = vmatprep.mubr.bf16.mxu0 %v4136_v0  ;;  %v1604_v7 = vrot.slane %v4641_v43, 4  ;;  %v4702_v31 = vpop.permute.xlu0 %917 }
 0x1cf   :  { %3852 = vmatmul.mubr.msk.bf16.vlgmr.msra.gmra.mrb[12].mxu1 %vm1082_vm10, %v4572_v1  ;;  %v4643_v57 = vpop.permute.xlu1 %1713  ;;  %v1494_v1 = vsel %vm634_vm2, %v1482_v50, %v1493_v38 }
 0x1d0   :  { %2617 = vmatprep.mubr.bf16.mxu1 %v4136_v0  ;;  %v1720_v42 = vrot.slane %v4643_v57, 4  ;;  %1501 = vst [vmem:[#allocation5 + $0x24] sm:$0xcc] %v1494_v1  ;;  %v1480_v41 = vpop.permute.xlu0 %1479 }
 0x1d1   :  { %v1487_v22 = vrot.slane %v1480_v41, 4 }
 0x1d3   :  { %v4645_v60 = vpop.permute.xlu1 %1599  ;;  %v1491_v32 = vsel %vm632_vm1, %v1487_v22, %v1488_v59 }
 0x1d4   :  { %v1605_v4 = vrot.slane %v4645_v60, 4  ;;  %v1492_v3 = vsel %vm634_vm2, %v1480_v41, %v1491_v32  ;;  %v1596_v54 = vpop.permute.xlu0 %1595 }
 0x1d5   :  { %1500 = vst [vmem:[#allocation5 + $0x1c] sm:$0xcc] %v1492_v3  ;;  %v1603_v40 = vrot.slane %v1596_v54, 4 }
 0x1d6   :  { %v1609_v9 = vsel %vm632_vm1, %v1604_v7, %v1605_v4 }
 0x1d7   :  { %v4657_v11 = vpop.permute.xlu1 %1715  ;;  %v1610_v13 = vsel %vm667_vm3, %v4641_v43, %v1609_v9  ;;  %v1607_v50 = vsel %vm632_vm1, %v1603_v40, %v1604_v7 }
 0x1d8   :  { %v1721_v62 = vrot.slane %v4657_v11, 4  ;;  %1617 = vst [vmem:[#allocation5 + $0x40] sm:$0xcc] %v1610_v13  ;;  %v1608_v59 = vsel %vm667_vm3, %v1596_v54, %v1607_v50  ;;  %v1712_v38 = vpop.permute.xlu0 %1711 }
 0x1d9   :  { %1616 = vst [vmem:[#allocation5 + $0x38] sm:$0xcc] %v1608_v59  ;;  %v1719_v9 = vrot.slane %v1712_v38, 4 }
 0x1da   :  { %v1725_v18 = vsel %vm632_vm1, %v1720_v42, %v1721_v62 }
 0x1db   :  { %v1726_v16 = vsel %vm700_vm4, %v4643_v57, %v1725_v18  ;;  %v4670_v58 = vpop.permute.xlu1 %1829  ;;  %v1723_v18 = vsel %vm632_vm1, %v1719_v9, %v1720_v42 }
 0x1dc   :  { %1733 = vst [vmem:[#allocation5 + $0x5c] sm:$0xcc] %v1726_v16  ;;  %v1836_v20 = vrot.slane %v4670_v58, 4  ;;  %v1724_v7 = vsel %vm700_vm4, %v1712_v38, %v1723_v18 }
 0x1dd   :  { %1732 = vst [vmem:[#allocation5 + $0x54] sm:$0xcc] %v1724_v7 }
 0x1df   :  { %v4672_v19 = vpop.permute.xlu1 %1945 }
 0x1e0   :  { %v1952_v2 = vrot.slane %v4672_v19, 4 }
 0x1e3   :  { %v4675_v26 = vpop.permute.xlu1 %1831 }
 0x1e4   :  { %v1837_v10 = vrot.slane %v4675_v26, 4 }
 0x1e6   :  { %v1841_v17 = vsel %vm632_vm1, %v1836_v20, %v1837_v10 }
 0x1e7   :  { %v1842_v27 = vsel %vm733_vm5, %v4670_v58, %v1841_v17  ;;  %v4686_v8 = vpop.permute.xlu1 %1947 }
 0x1e8   :  { %1849 = vst [vmem:[#allocation5 + $0x78] sm:$0xcc] %v1842_v27  ;;  %v1953_v5 = vrot.slane %v4686_v8, 4 }
 0x1ea   :  { %v1957_v63 = vsel %vm632_vm1, %v1952_v2, %v1953_v5 }
 0x1eb   :  { %v1958_v15 = vsel %vm766_vm6, %v4672_v19, %v1957_v63  ;;  %v4696_v28 = vpop.permute.xlu1 %2061 }
 0x1ec   :  { %1965 = vst [vmem:[#allocation5 + $0x94] sm:$0xcc] %v1958_v15  ;;  %v2068_v35 = vrot.slane %v4696_v28, 4  ;;  %v1828_v15 = vpop.permute.xlu0 %1827 }
 0x1ef   :  { %v4698_v29 = vpop.permute.xlu1 %2177 }
 0x1f0   :  { %v2184_v14 = vrot.slane %v4698_v29, 4 }
 0x1f3   :  { %v4700_v30 = vpop.permute.xlu1 %2063 }
 0x1f4   :  { %v2069_v61 = vrot.slane %v4700_v30, 4 }
 0x1f6   :  { %v2073_v36 = vsel %vm632_vm1, %v2068_v35, %v2069_v61 }
 0x1f7   :  { %v2074_v24 = vsel %vm799_vm7, %v4696_v28, %v2073_v36  ;;  %v4711_v25 = vpop.permute.xlu1 %2179  ;;  %v1835_v28 = vrot.slane %v1828_v15, 4 }
 0x1f8   :  { %2081 = vst [vmem:[#allocation5 + $0xb0] sm:$0xcc] %v2074_v24  ;;  %v2185_v23 = vrot.slane %v4711_v25, 4 }
 0x1fa   :  { %v2189_v44 = vsel %vm632_vm1, %v2184_v14, %v2185_v23 }
 0x1fb   :  { %v2190_v45 = vsel %vm832_vm8, %v4698_v29, %v2189_v44  ;;  %v2294_v49 = vpop.permute.xlu1 %2293 }
 0x1fc   :  { %2197 = vst [vmem:[#allocation5 + $0xcc] sm:$0xcc] %v2190_v45  ;;  %v2300_v21 = vrot.slane %v2294_v49, 4 }
 0x1ff   :  { %v4722_v37 = vpop.permute.xlu1 %2295 }
 0x200   :  { %v2301_v33 = vrot.slane %v4722_v37, 4 }
 0x202   :  { %v2305_v55 = vsel %vm632_vm1, %v2300_v21, %v2301_v33 }
 0x203   :  { %v2306_v47 = vsel %vm865_vm9, %v2294_v49, %v2305_v55  ;;  %v1486_v53 = vpop.permute.xlu1 %1485 }
 0x204   :  { %2313 = vst [vmem:[#allocation5 + $0xe8] sm:$0xcc] %v2306_v47  ;;  %v1490_v43 = vrot.slane %v1486_v53, 4 }
 0x206   :  { %v1495_v1 = vsel %vm632_vm1, %v1489_v6, %v1490_v43 }
 0x207   :  { %v1496_v13 = vsel %vm634_vm2, %v4639_v51, %v1495_v1  ;;  %v1602_v16 = vpop.permute.xlu1 %1601 }
 0x208   :  { %1502 = vst [vmem:[#allocation5 + $0x2c] sm:$0xcc] %v1496_v13  ;;  %v1606_v17 = vrot.slane %v1602_v16, 4 }
 0x20a   :  { %v1611_v27 = vsel %vm632_vm1, %v1605_v4, %v1606_v17  ;;  %v1839_v4 = vsel %vm632_vm1, %v1835_v28, %v1836_v20 }
 0x20b   :  { %v1612_v6 = vsel %vm667_vm3, %v4645_v60, %v1611_v27  ;;  %v1718_v63 = vpop.permute.xlu1 %1717  ;;  %v1840_v29 = vsel %vm733_vm5, %v1828_v15, %v1839_v4  ;;  %v1944_v60 = vpop.permute.xlu0 %1943 }
 0x20c   :  { %1618 = vst [vmem:[#allocation5 + $0x48] sm:$0xcc] %v1612_v6  ;;  %v1722_v51 = vrot.slane %v1718_v63, 4  ;;  %1848 = vst [vmem:[#allocation5 + $0x70] sm:$0xcc] %v1840_v29  ;;  %v1951_v36 = vrot.slane %v1944_v60, 4 }
 0x20e   :  { %v1727_v57 = vsel %vm632_vm1, %v1721_v62, %v1722_v51  ;;  %v1955_v24 = vsel %vm632_vm1, %v1951_v36, %v1952_v2 }
 0x20f   :  { %v1728_v42 = vsel %vm700_vm4, %v4657_v11, %v1727_v57  ;;  %v1956_v62 = vsel %vm766_vm6, %v1944_v60, %v1955_v24  ;;  %v2060_v11 = vpop.permute.xlu0 %2059 }
 0x210   :  { %1734 = vst [vmem:[#allocation5 + $0x64] sm:$0xcc] %v1728_v42  ;;  %1964 = vst [vmem:[#allocation5 + $0x8c] sm:$0xcc] %v1956_v62  ;;  %v2067_v41 = vrot.slane %v2060_v11, 4 }
 0x212   :  { %v2071_v22 = vsel %vm632_vm1, %v2067_v41, %v2068_v35 }
 0x213   :  { %v2072_v58 = vsel %vm799_vm7, %v2060_v11, %v2071_v22  ;;  %v2176_v44 = vpop.permute.xlu0 %2175 }
 0x214   :  { %2080 = vst [vmem:[#allocation5 + $0xa8] sm:$0xcc] %v2072_v58  ;;  %v2183_v20 = vrot.slane %v2176_v44, 4 }
 0x216   :  { %v2187_v45 = vsel %vm632_vm1, %v2183_v20, %v2184_v14 }
 0x217   :  { %v2188_v49 = vsel %vm832_vm8, %v2176_v44, %v2187_v45  ;;  %v2292_v32 = vpop.permute.xlu0 %2291 }
 0x218   :  { %2196 = vst [vmem:[#allocation5 + $0xc4] sm:$0xcc] %v2188_v49  ;;  %v2299_v19 = vrot.slane %v2292_v32, 4 }
 0x21a   :  { %v2303_v2 = vsel %vm632_vm1, %v2299_v19, %v2300_v21 }
 0x21b   :  { %v2304_v3 = vsel %vm865_vm9, %v2292_v32, %v2303_v2  ;;  %v1826_v32 = vrot.slane %v4384_v46, %v4333_v34  ;;  %v2058_v46 = vrot.slane %v4406_v52, %v4333_v34  ;;  %v2290_v52 = vrot.slane %v4439_v12, %v4333_v34 }
 0x21c   :  { %2312 = vst [vmem:[#allocation5 + $0xe0] sm:$0xcc] %v2304_v3  ;;  %v1942_v3 = vrot.slane %v4393_v48, %v4333_v34  ;;  %v2174_v48 = vrot.slane %v4415_v56, %v4333_v34 }
 0x28a   :  { %v1142_v54 = vpop.f32.mrb[8].mxu0 }
 0x28b   :  { %v1144_v40 = vpop.f32.mrb[9].mxu0  ;;  %v1143_v35 = vadd.f32 %v1142_v54, %v4702_v31 }
 0x28c   :  { %v1146_v55 = vpop.f32.mrb[10].mxu0  ;;  %v1145_v47 = vadd.f32 %v1144_v40, %v4702_v31 }
 0x28d   :  { %v1147_v53 = vpop.f32.mrb[11].mxu0 }
 0x28e   :  { %v1183_v50 = vpop.f32.mrb[8].mxu1  ;;  %v3707_v14 = vpack.c.bf16 %v1145_v47, %v1143_v35 }
 0x28f   :  { %v1184_v43 = vadd.f32 %v1183_v50, %v4702_v31  ;;  %v1185_v59 = vpop.f32.mrb[9].mxu1 }
 0x290   :  { %v1186_v38 = vadd.f32 %v1185_v59, %v4702_v31  ;;  %v1187_v9 = vpop.f32.mrb[10].mxu1  ;;  %v1293_v13 = vrot.slane %v3707_v14, %v4333_v34 }
 0x291   :  { %v1188_v21 = vpop.f32.mrb[11].mxu1 }
 0x292   :  { %v3708_v1 = vpack.c.bf16 %v1186_v38, %v1184_v43 }
 0x294   :  { %v1300_v18 = vrot.slane %v3708_v1, %v4333_v34 }
 0x296   :  { %v1301_v16 = vcombine.low %v1293_v13, %v1300_v18  ;;  %v4082_v7 = vcombine.low %v1300_v18, %v1300_v18 }
 0x298   :  { %3711 = vst.sshfl [vmem:[#allocation5] sm:$0xf pattern:$0x76325410] %v1301_v16  ;;  %v1514_v17 = vrot.slane %v1301_v16, %v4333_v34  ;;  %v1405_v27 = vrot.slane %v4082_v7, %v4333_v34 }
 0x299   :  { %3712 = vst.sshfl [vmem:[#allocation5 + $0x8] sm:$0xf pattern:$0x76325410] %v4082_v7 }
 0x29a   :  { %1537 = vrot.lane.b32.xlu0 %v1514_v17, %s4139_s0  ;;  %1421 = vrot.lane.b32.xlu1 %v1514_v17, %s4140_s24 }
 0x29e   :  { %v1224_v6 = vpop.f32.mrb[12].mxu0  ;;  %1653 = vrot.lane.b32.xlu0 %v1514_v17, %s4141_s25  ;;  %1423 = vrot.lane.b32.xlu1 %v1405_v27, %s4140_s24 }
 0x29f   :  { %v1225_v63 = vadd.f32 %v1224_v6, %v4702_v31  ;;  %v1226_v51 = vpop.f32.mrb[13].mxu0 }
 0x2a0   :  { %v1227_v57 = vadd.f32 %v1226_v51, %v4702_v31  ;;  %v1228_v42 = vpop.f32.mrb[14].mxu0 }
 0x2a1   :  { %v1229_v15 = vpop.f32.mrb[15].mxu0 }
 0x2a2   :  { %v3709_v28 = vpack.c.bf16 %v1227_v57, %v1225_v63  ;;  %v1265_v4 = vpop.f32.mrb[12].mxu1  ;;  %1769 = vrot.lane.b32.xlu0 %v1514_v17, %s4142_s28  ;;  %1539 = vrot.lane.b32.xlu1 %v1405_v27, %s4139_s0  ;;  %v2352_v57 = vld [vmem:[%s5256_s6] sm:$0xf] }
 0x2a3   :  { %v1266_v29 = vadd.f32 %v1265_v4, %v4702_v31  ;;  %v3853_v60 = vpop.f32.mrb[13].mxu1 }
 0x2a4   :  { %v1268_v36 = vpop.f32.mrb[14].mxu1  ;;  %v1309_v11 = vrot.slane %v3709_v28, %v4333_v34 }
 0x2a5   :  { %v1277_v24 = vpack.c.bf16 %v1266_v29, %v1266_v29  ;;  %v3854_v62 = vpop.f32.mrb[15].mxu1 }
 0x2a6   :  { %1885 = vrot.lane.b32.xlu0 %v1514_v17, %s4143_s29  ;;  %1655 = vrot.lane.b32.xlu1 %v1405_v27, %s4141_s25 }
 0x2a7   :  { %v1316_v41 = vrot.slane %v1277_v24, %v4333_v34 }
 0x2a9   :  { %v1317_v22 = vcombine.low %v1309_v11, %v1316_v41 }
 0x2aa   :  { %2001 = vrot.lane.b32.xlu0 %v1514_v17, %s4144_s30  ;;  %1771 = vrot.lane.b32.xlu1 %v1405_v27, %s4142_s28 }
 0x2ab   :  { %1321 = vst [vmem:[#allocation3 + $0x8] sm:$0x3f] %v1317_v22 }
 0x2ae   :  { %2117 = vrot.lane.b32.xlu0 %v1514_v17, %s4145_s10  ;;  %1887 = vrot.lane.b32.xlu1 %v1405_v27, %s4143_s29 }
 0x2b2   :  { %v3710_v31 = vld.sshfl [vmem:[#allocation3 + $0x8] sm:$0x33 pattern:$0x76325410]  ;;  %2233 = vrot.lane.b32.xlu0 %v1514_v17, %s4146_s11  ;;  %2003 = vrot.lane.b32.xlu1 %v1405_v27, %s4144_s30 }
 0x2b3   :  { %v1388_v58 = vld [vmem:[#allocation3 + $0x8] sm:$0x3f]  ;;  %1353 = vst [vmem:[#allocation5 + $0x10] sm:$0x33] %v3710_v31 }
 0x2b4   :  { %v1413_v44 = vrot.slane %v1388_v58, %v4333_v34  ;;  %v1504_v20 = vld [vmem:[#allocation3 + $0x8] sm:$0x3f]  ;;  %v1406_v56 = vcombine.high %v1388_v58, %v1388_v58 }
 0x2b5   :  { %v1529_v45 = vrot.slane %v1504_v20, %v4333_v34  ;;  %v1620_v49 = vld [vmem:[#allocation3 + $0x8] sm:$0x3f]  ;;  %v1522_v38 = vcombine.high %v1504_v20, %v1504_v20 }
 0x2b6   :  { %2119 = vrot.lane.b32.xlu1 %v1405_v27, %s4145_s10  ;;  %1425 = vrot.lane.b32.xlu0 %v1413_v44, %s4140_s24  ;;  %v1645_v19 = vrot.slane %v1620_v49, %v4333_v34  ;;  %v1736_v2 = vld [vmem:[#allocation3 + $0x8] sm:$0x3f]  ;;  %v1420_v59 = vrot.slane %v1406_v56, %v4333_v34  ;;  %v1638_v12 = vcombine.high %v1620_v49, %v1620_v49 }
 0x2b7   :  { %v1761_v54 = vrot.slane %v1736_v2, %v4333_v34  ;;  %v1852_v40 = vld [vmem:[#allocation3 + $0x8] sm:$0x3f]  ;;  %v1536_v9 = vrot.slane %v1522_v38, %v4333_v34  ;;  %v1754_v1 = vcombine.high %v1736_v2, %v1736_v2 }
 0x2b8   :  { %v1877_v35 = vrot.slane %v1852_v40, %v4333_v34  ;;  %v1968_v55 = vld [vmem:[#allocation3 + $0x8] sm:$0x3f]  ;;  %v1652_v21 = vrot.slane %v1638_v12, %v4333_v34  ;;  %v1870_v18 = vcombine.high %v1852_v40, %v1852_v40 }
 0x2b9   :  { %v1993_v47 = vrot.slane %v1968_v55, %v4333_v34  ;;  %v2084_v53 = vld [vmem:[#allocation3 + $0x8] sm:$0x3f]  ;;  %v1768_v13 = vrot.slane %v1754_v1, %v4333_v34  ;;  %v1986_v7 = vcombine.high %v1968_v55, %v1968_v55 }
 0x2ba   :  { %2235 = vrot.lane.b32.xlu1 %v1405_v27, %s4146_s11  ;;  %1541 = vrot.lane.b32.xlu0 %v1529_v45, %s4139_s0  ;;  %v2109_v50 = vrot.slane %v2084_v53, %v4333_v34  ;;  %v2200_v14 = vld [vmem:[#allocation3 + $0x8] sm:$0x3f]  ;;  %v1884_v16 = vrot.slane %v1870_v18, %v4333_v34  ;;  %v2102_v27 = vcombine.high %v2084_v53, %v2084_v53 }
 0x2bb   :  { %v2225_v43 = vrot.slane %v2200_v14, %v4333_v34  ;;  %v2000_v17 = vrot.slane %v1986_v7, %v4333_v34  ;;  %v2218_v63 = vcombine.high %v2200_v14, %v2200_v14 }
 0x2bc   :  { %v2116_v6 = vrot.slane %v2102_v27, %v4333_v34 }
 0x2bd   :  { %v2232_v51 = vrot.slane %v2218_v63, %v4333_v34 }
 0x2be   :  { %1833 = vrot.lane.b32.xlu1 %v1826_v32, %s4142_s28  ;;  %1657 = vrot.lane.b32.xlu0 %v1645_v19, %s4141_s25 }
 0x2c2   :  { %1949 = vrot.lane.b32.xlu1 %v1942_v3, %s4143_s29  ;;  %1773 = vrot.lane.b32.xlu0 %v1761_v54, %s4142_s28 }
 0x2c6   :  { %2065 = vrot.lane.b32.xlu1 %v2058_v46, %s4144_s30  ;;  %1889 = vrot.lane.b32.xlu0 %v1877_v35, %s4143_s29 }
 0x2ca   :  { %2181 = vrot.lane.b32.xlu1 %v2174_v48, %s4145_s10  ;;  %2005 = vrot.lane.b32.xlu0 %v1993_v47, %s4144_s30 }
 0x2ce   :  { %2297 = vrot.lane.b32.xlu1 %v2290_v52, %s4146_s11  ;;  %2121 = vrot.lane.b32.xlu0 %v2109_v50, %s4145_s10 }
 0x2d2   :  { %2237 = vrot.lane.b32.xlu0 %v2225_v43, %s4146_s11 }
 0x2d6   :  { %1427 = vrot.lane.b32.xlu0 %v1420_v59, %s4140_s24 }
 0x2da   :  { %1543 = vrot.lane.b32.xlu0 %v1536_v9, %s4139_s0 }
 0x2de   :  { %1659 = vrot.lane.b32.xlu0 %v1652_v21, %s4141_s25 }
 0x2e2   :  { %1775 = vrot.lane.b32.xlu0 %v1768_v13, %s4142_s28 }
 0x2e6   :  { %1891 = vrot.lane.b32.xlu0 %v1884_v16, %s4143_s29 }
 0x2ea   :  { %2007 = vrot.lane.b32.xlu0 %v2000_v17, %s4144_s30 }
 0x2ee   :  { %2123 = vrot.lane.b32.xlu0 %v2116_v6, %s4145_s10 }
 0x2f2   :  { %2239 = vrot.lane.b32.xlu0 %v2232_v51, %s4146_s11 }
 0x2f6   :  { %2355 = vperm.xlu0 %3895, %v2352_v57  }
 0x30c   :  { %v1538_v42 = vpop.permute.xlu0 %1537  ;;  %v1422_v15 = vpop.permute.xlu1 %1421 }
 0x30d   :  { %v1429_v29 = vrot.slane %v1422_v15, 4  ;;  %v1545_v41 = vrot.slane %v1538_v42, 4 }
 0x310   :  { %v1654_v28 = vpop.permute.xlu0 %1653  ;;  %v1424_v4 = vpop.permute.xlu1 %1423 }
 0x311   :  { %v1430_v60 = vrot.slane %v1424_v4, 4  ;;  %v1661_v45 = vrot.slane %v1654_v28, 4 }
 0x313   :  { %v1433_v36 = vsel %vm632_vm1, %v1429_v29, %v1430_v60 }
 0x314   :  { %v1434_v24 = vsel %vm634_vm2, %v1422_v15, %v1433_v36  ;;  %v1770_v62 = vpop.permute.xlu0 %1769  ;;  %v4845_v11 = vpop.permute.xlu1 %1539 }
 0x315   :  { %1442 = vst [vmem:[#allocation5 + $0x1c] sm:$0x33] %v1434_v24  ;;  %v1546_v22 = vrot.slane %v4845_v11, 4  ;;  %v1777_v46 = vrot.slane %v1770_v62, 4 }
 0x317   :  { %v1549_v31 = vsel %vm632_vm1, %v1545_v41, %v1546_v22 }
 0x318   :  { %v1550_v58 = vsel %vm667_vm3, %v1538_v42, %v1549_v31  ;;  %v1886_v44 = vpop.permute.xlu0 %1885  ;;  %v4850_v20 = vpop.permute.xlu1 %1655 }
 0x319   :  { %1558 = vst [vmem:[#allocation5 + $0x38] sm:$0x33] %v1550_v58  ;;  %v1662_v49 = vrot.slane %v4850_v20, 4  ;;  %v1893_v52 = vrot.slane %v1886_v44, 4 }
 0x31b   :  { %v1665_v32 = vsel %vm632_vm1, %v1661_v45, %v1662_v49 }
 0x31c   :  { %v1666_v19 = vsel %vm700_vm4, %v1654_v28, %v1665_v32  ;;  %v2002_v2 = vpop.permute.xlu0 %2001  ;;  %v4857_v3 = vpop.permute.xlu1 %1771  ;;  %v4000_v54 = vld [vmem:[#allocation5 + $0x4] ss:$28 sps:$4 sm:$0xff]  }
 0x31d   :  { %v4002_v40 = vld [vmem:[#allocation5] ss:$28 sps:$4 sm:$0xff]   ;;  %1674 = vst [vmem:[#allocation5 + $0x54] sm:$0x33] %v1666_v19  ;;  %v1778_v35 = vrot.slane %v4857_v3, 4  ;;  %2544 = vmatprep.subr.bf16.mxu0 %v4000_v54  ;;  %v2009_v12 = vrot.slane %v2002_v2, 4 }
 0x31e   :  { %2545 = vmatpush1.bf16.msra.mxu0 %v4002_v40 }
 0x31f   :  { %v1781_v55 = vsel %vm632_vm1, %v1777_v46, %v1778_v35 }
 0x320   :  { %v1782_v48 = vsel %vm733_vm5, %v1770_v62, %v1781_v55  ;;  %v2118_v47 = vpop.permute.xlu0 %2117  ;;  %v4864_v53 = vpop.permute.xlu1 %1887 }
 0x321   :  { %1790 = vst [vmem:[#allocation5 + $0x70] sm:$0x33] %v1782_v48  ;;  %v1894_v50 = vrot.slane %v4864_v53, 4  ;;  %v2125_v7 = vrot.slane %v2118_v47, 4 }
 0x323   :  { %v1897_v14 = vsel %vm632_vm1, %v1893_v52, %v1894_v50 }
 0x324   :  { %v1898_v43 = vsel %vm766_vm6, %v1886_v44, %v1897_v14  ;;  %v2234_v56 = vpop.permute.xlu0 %2233  ;;  %v4871_v59 = vpop.permute.xlu1 %2003  ;;  %v4003_v38 = vld [vmem:[#allocation5 + $0x3c] ss:$28 sps:$4 sm:$0xff]  }
 0x325   :  { %v4005_v9 = vld [vmem:[#allocation5 + $0x38] ss:$28 sps:$4 sm:$0xff]   ;;  %1906 = vst [vmem:[#allocation5 + $0x8c] sm:$0x33] %v1898_v43  ;;  %v2010_v21 = vrot.slane %v4871_v59, 4  ;;  %2546 = vmatprep.subr.bf16.mxu0 %v4003_v38  ;;  %v2241_v36 = vrot.slane %v2234_v56, 4 }
 0x326   :  { %2547 = vmatpush1.bf16.msra.mxu0 %v4005_v9 }
 0x327   :  { %v2013_v1 = vsel %vm632_vm1, %v2009_v12, %v2010_v21 }
 0x328   :  { %v2014_v13 = vsel %vm799_vm7, %v2002_v2, %v2013_v1  ;;  %v4878_v18 = vpop.permute.xlu1 %2119  ;;  %v4880_v16 = vpop.permute.xlu0 %1425 }
 0x329   :  { %2022 = vst [vmem:[#allocation5 + $0xa8] sm:$0x33] %v2014_v13  ;;  %v2126_v17 = vrot.slane %v4878_v18, 4  ;;  %v1431_v27 = vrot.slane %v4880_v16, 4  ;;  %v4953_v13 = vld [vmem:[%s5255_s5] sm:$0x3] }
 0x32b   :  { %v2129_v6 = vsel %vm632_vm1, %v2125_v7, %v2126_v17  ;;  %v1435_v63 = vsel %vm632_vm1, %v1430_v60, %v1431_v27 }
 0x32c   :  { %v2130_v51 = vsel %vm832_vm8, %v2118_v47, %v2129_v6  ;;  %v1436_v57 = vsel %vm634_vm2, %v1424_v4, %v1435_v63  ;;  %v4892_v42 = vpop.permute.xlu1 %2235  ;;  %v4894_v15 = vpop.permute.xlu0 %1541  ;;  %v4006_v28 = vld [vmem:[#allocation5 + $0x70] ss:$28 sps:$4 sm:$0xff]  }
 0x32d   :  { %v4008_v29 = vld [vmem:[#allocation5 + $0x74] ss:$28 sps:$4 sm:$0xff]   ;;  %2138 = vst [vmem:[#allocation5 + $0xc4] sm:$0x33] %v2130_v51  ;;  %1443 = vst [vmem:[#allocation5 + $0x24] sm:$0x33] %v1436_v57 }
 0x32e   :  { %v2242_v24 = vrot.slane %v4892_v42, 4  ;;  %v1547_v62 = vrot.slane %v4894_v15, 4  ;;  %2548 = vmatprep.subr.bf16.mxu0 %v4008_v29 }
 0x32f   :  { %2549 = vmatpush1.bf16.msra.mxu0 %v4006_v28 }
 0x330   :  { %v2245_v60 = vsel %vm632_vm1, %v2241_v36, %v2242_v24  ;;  %v1551_v4 = vsel %vm632_vm1, %v1546_v22, %v1547_v62  ;;  %v1834_v58 = vpop.permute.xlu1 %1833  ;;  %v4907_v44 = vpop.permute.xlu0 %1657 }
 0x331   :  { %v2246_v41 = vsel %vm865_vm9, %v2234_v56, %v2245_v60  ;;  %v1552_v31 = vsel %vm667_vm3, %v4845_v11, %v1551_v4  ;;  %v1838_v45 = vrot.slane %v1834_v58, 4  ;;  %v1663_v32 = vrot.slane %v4907_v44, 4 }
 0x332   :  { %2254 = vst [vmem:[#allocation5 + $0xe0] sm:$0x33] %v2246_v41  ;;  %1559 = vst [vmem:[#allocation5 + $0x40] sm:$0x33] %v1552_v31 }
 0x333   :  { %v1843_v19 = vsel %vm632_vm1, %v1837_v10, %v1838_v45  ;;  %v1667_v22 = vsel %vm632_vm1, %v1662_v49, %v1663_v32 }
 0x334   :  { %v1844_v11 = vsel %vm733_vm5, %v4675_v26, %v1843_v19  ;;  %v1668_v2 = vsel %vm700_vm4, %v4850_v20, %v1667_v22  ;;  %v1950_v54 = vpop.permute.xlu1 %1949  ;;  %v4922_v40 = vpop.permute.xlu0 %1773  ;;  %v4009_v46 = vld [vmem:[#allocation5 + $0xa8] ss:$28 sps:$4 sm:$0xff]  }
 0x335   :  { %v4011_v55 = vld [vmem:[#allocation5 + $0xac] ss:$28 sps:$4 sm:$0xff]   ;;  %1850 = vst [vmem:[#allocation5 + $0x80] sm:$0xcc] %v1844_v11  ;;  %1675 = vst [vmem:[#allocation5 + $0x5c] sm:$0x33] %v1668_v2 }
 0x336   :  { %v1954_v10 = vrot.slane %v1950_v54, 4  ;;  %v1779_v48 = vrot.slane %v4922_v40, 4  ;;  %v4012_v47 = vld [vmem:[#allocation5 + $0xc] ss:$28 sps:$4 sm:$0xff]   ;;  %2550 = vmatprep.subr.bf16.mxu0 %v4011_v55 }
 0x337   :  { %v4014_v52 = vld [vmem:[#allocation5 + $0x8] ss:$28 sps:$4 sm:$0xff]   ;;  %2585 = vmatprep.subr.bf16.mxu1 %v4012_v47  ;;  %2551 = vmatpush1.bf16.msra.mxu0 %v4009_v46 }
 0x338   :  { %v1959_v26 = vsel %vm632_vm1, %v1953_v5, %v1954_v10  ;;  %v1783_v20 = vsel %vm632_vm1, %v1778_v35, %v1779_v48  ;;  %v2066_v43 = vpop.permute.xlu1 %2065  ;;  %2586 = vmatpush1.bf16.msra.mxu1 %v4014_v52  ;;  %v4937_v56 = vpop.permute.xlu0 %1889 }
 0x339   :  { %v1960_v49 = vsel %vm766_vm6, %v4686_v8, %v1959_v26  ;;  %v1784_v14 = vsel %vm733_vm5, %v4857_v3, %v1783_v20  ;;  %v2348_v38 = vld [vmem:[#allocation5 + $0xe0] sm:$0xff]  ;;  %v2070_v5 = vrot.slane %v2066_v43, 4  ;;  %v1895_v9 = vrot.slane %v4937_v56, 4 }
 0x33a   :  { %1966 = vst [vmem:[#allocation5 + $0x9c] sm:$0xcc] %v1960_v49  ;;  %1791 = vst [vmem:[#allocation5 + $0x78] sm:$0x33] %v1784_v14  ;;  %v3745_v12 = vcombine.high %v2348_v38, %v2348_v38  ;;  %v3744_v35 = vcombine.low %v2348_v38, %v2348_v38  ;;  %v4030_v14 = vld [vmem:[#allocation5 + $0x18] ss:$28 sps:$4 sm:$0xff]  }
 0x33b   :  { %v2075_v1 = vsel %vm632_vm1, %v2069_v61, %v2070_v5  ;;  %v1899_v8 = vsel %vm632_vm1, %v1894_v50, %v1895_v9 }
 0x33c   :  { %3751 = vmatprep.subr.msk.bf16.mxu0 %vm632_vm1, %v3745_v12  ;;  %v2524_v3 = vsel %vm632_vm1, %v3744_v35, 0  ;;  %v2076_v7 = vsel %vm799_vm7, %v4700_v30, %v2075_v1  ;;  %v1900_v61 = vsel %vm766_vm6, %v4864_v53, %v1899_v8  ;;  %v2182_v6 = vpop.permute.xlu1 %2181  ;;  %v4959_v63 = vpop.permute.xlu0 %2005  ;;  %v4017_v50 = vld [vmem:[#allocation5 + $0x44] ss:$28 sps:$4 sm:$0xff]   ;;  %v4032_v35 = vld [vmem:[#allocation5 + $0x50] ss:$28 sps:$4 sm:$0xff]  }
 0x33d   :  { %2553 = vmatpush1.bf16.msra.mxu0 %v2524_v3  ;;  %v4019_v51 = vld [vmem:[#allocation5 + $0x40] ss:$28 sps:$4 sm:$0xff]   ;;  %2082 = vst [vmem:[#allocation5 + $0xb8] sm:$0xcc] %v2076_v7  ;;  %1907 = vst [vmem:[#allocation5 + $0x94] sm:$0x33] %v1900_v61  ;;  %2587 = vmatprep.subr.bf16.mxu1 %v4017_v50 }
 0x33e   :  { %v2186_v57 = vrot.slane %v2182_v6, 4  ;;  %v2011_v28 = vrot.slane %v4959_v63, 4  ;;  %2588 = vmatpush1.bf16.msra.mxu1 %v4019_v51  ;;  %v4035_v8 = vld [vmem:[#allocation5 + $0x88] ss:$28 sps:$4 sm:$0xff]  }
 0x340   :  { %v2191_v29 = vsel %vm632_vm1, %v2185_v23, %v2186_v57  ;;  %v2015_v30 = vsel %vm632_vm1, %v2010_v21, %v2011_v28  ;;  %3752 = vmatmul.mubr.msk.bf16.vlgmr.msra.gmra.mrb[16].mxu0 %vm1082_vm10, %v4953_v13  ;;  %v2298_v60 = vpop.permute.xlu1 %2297  ;;  %v4976_v4 = vpop.permute.xlu0 %2121 }
 0x341   :  { %v2192_v53 = vsel %vm832_vm8, %v4711_v25, %v2191_v29  ;;  %v2016_v36 = vsel %vm799_vm7, %v4871_v59, %v2015_v30  ;;  %2658 = vmatprep.mubr.bf16.mxu0 %v4136_v0  ;;  %v2302_v23 = vrot.slane %v2298_v60, 4  ;;  %v2127_v21 = vrot.slane %v4976_v4, 4  ;;  %v4041_v29 = vld [vmem:[#allocation5 + $0xf8] ss:$0 sps:$4 sm:$0xff]  }
 0x342   :  { %2198 = vst [vmem:[#allocation5 + $0xd4] sm:$0xcc] %v2192_v53  ;;  %2023 = vst [vmem:[#allocation5 + $0xb0] sm:$0x33] %v2016_v36 }
 0x343   :  { %v2307_v41 = vsel %vm632_vm1, %v2301_v33, %v2302_v23  ;;  %v2131_v25 = vsel %vm632_vm1, %v2126_v17, %v2127_v21  ;;  %v2542_v23 = vsel %vm632_vm1, %v4041_v29, 0 }
 0x344   :  { %v2308_v59 = vsel %vm865_vm9, %v4722_v37, %v2307_v41  ;;  %v2132_v31 = vsel %vm832_vm8, %v4878_v18, %v2131_v25  ;;  %v4992_v58 = vpop.permute.xlu0 %2237  ;;  %v4020_v45 = vld [vmem:[#allocation5 + $0x78] ss:$28 sps:$4 sm:$0xff]  }
 0x345   :  { %v4022_v19 = vld [vmem:[#allocation5 + $0x7c] ss:$28 sps:$4 sm:$0xff]   ;;  %2314 = vst [vmem:[#allocation5 + $0xf0] sm:$0xcc] %v2308_v59  ;;  %2139 = vst [vmem:[#allocation5 + $0xcc] sm:$0x33] %v2132_v31 }
 0x346   :  { %v2243_v33 = vrot.slane %v4992_v58, 4  ;;  %2589 = vmatprep.subr.bf16.mxu1 %v4022_v19 }
 0x347   :  { %2590 = vmatpush1.bf16.msra.mxu1 %v4020_v45 }
 0x348   :  { %v2247_v17 = vsel %vm632_vm1, %v2242_v24, %v2243_v33  ;;  %v1428_v18 = vpop.permute.xlu0 %1427 }
 0x349   :  { %v2248_v37 = vsel %vm865_vm9, %v4892_v42, %v2247_v17  ;;  %v1432_v22 = vrot.slane %v1428_v18, 4 }
 0x34a   :  { %2255 = vst [vmem:[#allocation5 + $0xe8] sm:$0x33] %v2248_v37 }
 0x34b   :  { %v1437_v11 = vsel %vm632_vm1, %v1431_v27, %v1432_v22 }
 0x34c   :  { %v1438_v2 = vsel %vm634_vm2, %v4880_v16, %v1437_v11  ;;  %v1544_v54 = vpop.permute.xlu0 %1543  ;;  %v4023_v46 = vld [vmem:[#allocation5 + $0xb0] ss:$28 sps:$4 sm:$0xff]  }
 0x34d   :  { %v4025_v55 = vld [vmem:[#allocation5 + $0xb4] ss:$28 sps:$4 sm:$0xff]   ;;  %1444 = vst [vmem:[#allocation5 + $0x2c] sm:$0x33] %v1438_v2  ;;  %v1548_v10 = vrot.slane %v1544_v54, 4 }
 0x34e   :  { %2591 = vmatprep.subr.bf16.mxu1 %v4025_v55 }
 0x34f   :  { %v1553_v42 = vsel %vm632_vm1, %v1547_v62, %v1548_v10  ;;  %2592 = vmatpush1.bf16.msra.mxu1 %v4023_v46 }
 0x350   :  { %v1554_v24 = vsel %vm667_vm3, %v4894_v15, %v1553_v42  ;;  %v1660_v47 = vpop.permute.xlu0 %1659 }
 0x351   :  { %v2349_v52 = vld [vmem:[#allocation5 + $0xe8] sm:$0xff]  ;;  %1560 = vst [vmem:[#allocation5 + $0x48] sm:$0x33] %v1554_v24  ;;  %v1664_v27 = vrot.slane %v1660_v47, 4 }
 0x352   :  { %v3747_v26 = vcombine.high %v2349_v52, %v2349_v52  ;;  %v3746_v16 = vcombine.low %v2349_v52, %v2349_v52 }
 0x353   :  { %v1669_v20 = vsel %vm632_vm1, %v1663_v32, %v1664_v27 }
 0x354   :  { %3753 = vmatprep.subr.msk.bf16.mxu1 %vm632_vm1, %v3747_v26  ;;  %v2530_v49 = vsel %vm632_vm1, %v3746_v16, 0  ;;  %v1670_v62 = vsel %vm700_vm4, %v4907_v44, %v1669_v20  ;;  %v1776_v15 = vpop.permute.xlu0 %1775  ;;  %v4028_v43 = vld [vmem:[#allocation5 + $0x14] ss:$28 sps:$4 sm:$0xff]  }
 0x355   :  { %2594 = vmatpush1.bf16.msra.mxu1 %v2530_v49  ;;  %v4031_v38 = vld [vmem:[#allocation5 + $0x10] ss:$28 sps:$4 sm:$0xff]   ;;  %1676 = vst [vmem:[#allocation5 + $0x64] sm:$0x33] %v1670_v62  ;;  %v1780_v5 = vrot.slane %v1776_v15, 4  ;;  %2626 = vmatprep.subr.bf16.mxu0 %v4028_v43 }
 0x356   :  { %3855 = vmatprep.subr.bf16.mxu1 %v4137_v39  ;;  %2627 = vmatpush1.bf16.msra.mxu0 %v4031_v38 }
 0x357   :  { %v1785_v32 = vsel %vm632_vm1, %v1779_v48, %v1780_v5 }
 0x358   :  { %3754 = vmatmul.mubr.msk.bf16.vlgmr.msra.gmra.mrb[16].mxu1 %vm1082_vm10, %v4953_v13  ;;  %v1786_v44 = vsel %vm733_vm5, %v4922_v40, %v1785_v32  ;;  %v1892_v12 = vpop.permute.xlu0 %1891 }
 0x359   :  { %3856 = vmatpush3.bf16.msra.mxu1 %v4030_v14  ;;  %3865 = vmatprep.mubr.msk.bf16.mxu1 %vm4138_vm0, %v4137_v39  ;;  %1792 = vst [vmem:[#allocation5 + $0x80] sm:$0x33] %v1786_v44  ;;  %v1896_v1 = vrot.slane %v1892_v12, 4 }
 0x35a   :  { %3857 = vmatprep.subr.bf16.mxu1 %v4137_v39 }
 0x35b   :  { %v1901_v48 = vsel %vm632_vm1, %v1895_v9, %v1896_v1 }
 0x35c   :  { %v1902_v3 = vsel %vm766_vm6, %v4937_v56, %v1901_v48  ;;  %v2008_v40 = vpop.permute.xlu0 %2007  ;;  %v4033_v7 = vld [vmem:[#allocation5 + $0x4c] ss:$28 sps:$4 sm:$0xff]   ;;  %v4037_v56 = vld [vmem:[#allocation5 + $0xc0] ss:$28 sps:$4 sm:$0xff]  }
 0x35d   :  { %3858 = vmatpush3.bf16.msra.mxu1 %v4032_v35  ;;  %v4036_v61 = vld [vmem:[#allocation5 + $0x48] ss:$28 sps:$4 sm:$0xff]   ;;  %1908 = vst [vmem:[#allocation5 + $0x9c] sm:$0x33] %v1902_v3  ;;  %v2012_v6 = vrot.slane %v2008_v40, 4  ;;  %2628 = vmatprep.subr.bf16.mxu0 %v4033_v7 }
 0x35e   :  { %3859 = vmatprep.subr.bf16.mxu1 %v4137_v39  ;;  %2629 = vmatpush1.bf16.msra.mxu0 %v4036_v61 }
 0x35f   :  { %v2017_v50 = vsel %vm632_vm1, %v2011_v28, %v2012_v6 }
 0x360   :  { %v2018_v9 = vsel %vm799_vm7, %v4959_v63, %v2017_v50  ;;  %v2124_v51 = vpop.permute.xlu0 %2123 }
 0x361   :  { %3860 = vmatpush3.bf16.msra.mxu1 %v4035_v8  ;;  %2024 = vst [vmem:[#allocation5 + $0xb8] sm:$0x33] %v2018_v9  ;;  %v2128_v57 = vrot.slane %v2124_v51, 4 }
 0x362   :  { %3861 = vmatprep.subr.bf16.mxu1 %v4137_v39 }
 0x363   :  { %v2133_v30 = vsel %vm632_vm1, %v2127_v21, %v2128_v57 }
 0x364   :  { %v2134_v53 = vsel %vm832_vm8, %v4976_v4, %v2133_v30  ;;  %v2240_v28 = vpop.permute.xlu0 %2239  ;;  %v4038_v36 = vld [vmem:[#allocation5 + $0x80] ss:$28 sps:$4 sm:$0xff]  }
 0x365   :  { %3862 = vmatpush3.bf16.msra.mxu1 %v4037_v56  ;;  %v4040_v60 = vld [vmem:[#allocation5 + $0x84] ss:$28 sps:$4 sm:$0xff]   ;;  %2140 = vst [vmem:[#allocation5 + $0xd4] sm:$0x33] %v2134_v53  ;;  %v2244_v63 = vrot.slane %v2240_v28, 4 }
 0x366   :  { %3863 = vmatprep.subr.bf16.mxu1 %v4137_v39  ;;  %2630 = vmatprep.subr.bf16.mxu0 %v4040_v60 }
 0x367   :  { %v2249_v41 = vsel %vm632_vm1, %v2243_v33, %v2244_v63  ;;  %2631 = vmatpush1.bf16.msra.mxu0 %v4038_v36 }
 0x368   :  { %v2250_v21 = vsel %vm865_vm9, %v4992_v58, %v2249_v41 }
 0x369   :  { %3864 = vmatpush3.bf16.msra.mxu1 %v2542_v23  ;;  %2256 = vst [vmem:[#allocation5 + $0xf0] sm:$0x33] %v2250_v21 }
 0x36c   :  { %3866 = vmatmul.mubr.msk.bf16.vlgmr.msra.gmra.mrb[20].mxu1 %vm1082_vm10, %v4953_v13  ;;  %v4042_v4 = vld [vmem:[#allocation5 + $0xb8] ss:$28 sps:$4 sm:$0xff]  }
 0x36d   :  { %v4044_v25 = vld [vmem:[#allocation5 + $0xbc] ss:$28 sps:$4 sm:$0xff]   ;;  %3477 = vmatprep.mubr.bf16.mxu1 %v4136_v0 }
 0x36e   :  { %2632 = vmatprep.subr.bf16.mxu0 %v4044_v25 }
 0x36f   :  { %2633 = vmatpush1.bf16.msra.mxu0 %v4042_v4 }
 0x370   :  { %v2350_v59 = vld [vmem:[#allocation5 + $0xf0] sm:$0xff] }
 0x371   :  { %v3749_v31 = vcombine.high %v2350_v59, %v2350_v59  ;;  %v3748_v45 = vcombine.low %v2350_v59, %v2350_v59 }
 0x373   :  { %3755 = vmatprep.subr.msk.bf16.mxu0 %vm632_vm1, %v3749_v31  ;;  %v2536_v19 = vsel %vm632_vm1, %v3748_v45, 0 }
 0x374   :  { %2635 = vmatpush1.bf16.msra.mxu0 %v2536_v19 }
 0x375   :  { %v2356_v58 = vpop.permute.xlu0 %2355 }
 0x377   :  { %3756 = vmatmul.mubr.msk.bf16.vlgmr.msra.gmra.mrb[20].mxu0 %vm1082_vm10, %v4953_v13 }
 0x378   :  { %3436 = vmatprep.mubr.bf16.mxu0 %v4136_v0 }
 0x413   :  { %v2578_v33 = vpop.f32.mrb[16].mxu0 }
 0x414   :  { %v2579_v17 = vadd.f32 %v2578_v33, %v2356_v58  ;;  %v2580_v37 = vpop.f32.mrb[17].mxu0 }
 0x415   :  { %v2581_v18 = vadd.f32 %v2580_v37, %v2356_v58  ;;  %v2582_v22 = vpop.f32.mrb[18].mxu0 }
 0x416   :  { %v2707_v11 = vmax.f32 %v2579_v17, 0.0  ;;  %v2583_v2 = vpop.f32.mrb[19].mxu0 }
 0x417   :  { %v2708_v54 = vmax.f32 %v2581_v18, 0.0 }
 0x419   :  { %v3758_v46 = vpack.c.bf16 %v2708_v54, %v2707_v11 }
 0x41b   :  { %v2736_v16 = vrot.slane %v3758_v46, %v4333_v34 }
 0x41d   :  { %v4084_v43 = vcombine.low %v2736_v16, %v2736_v16 }
 0x41f   :  { %v2808_v44 = vrot.slane %v4084_v43, %v4333_v34 }
 0x42b   :  { %v2619_v55 = vpop.f32.mrb[16].mxu1 }
 0x42c   :  { %v2620_v10 = vadd.f32 %v2619_v55, %v2356_v58  ;;  %v2621_v42 = vpop.f32.mrb[17].mxu1 }
 0x42d   :  { %v2622_v24 = vadd.f32 %v2621_v42, %v2356_v58  ;;  %v2623_v47 = vpop.f32.mrb[18].mxu1 }
 0x42e   :  { %v2709_v52 = vmax.f32 %v2620_v10, 0.0  ;;  %v2624_v27 = vpop.f32.mrb[19].mxu1 }
 0x42f   :  { %v2710_v13 = vmax.f32 %v2622_v24, 0.0 }
 0x431   :  { %v3759_v26 = vpack.c.bf16 %v2710_v13, %v2709_v52 }
 0x433   :  { %v2743_v20 = vrot.slane %v3759_v26, %v4333_v34  ;;  %v3282_v26 = vld [vmem:[%s5258_s8] sm:$0xf] }
 0x435   :  { %v2744_v49 = vcombine.low %v2736_v16, %v2743_v20  ;;  %v4083_v14 = vcombine.low %v2743_v20, %v2743_v20 }
 0x437   :  { %3762 = vst.sshfl [vmem:[#allocation5] sm:$0xf pattern:$0x76325410] %v2744_v49  ;;  %v2866_v62 = vrot.slane %v2744_v49, %v4333_v34  ;;  %v2873_v48 = vrot.slane %v4083_v14, %v4333_v34 }
 0x438   :  { %3763 = vst.sshfl [vmem:[#allocation5 + $0x8] sm:$0xf pattern:$0x76325410] %v4083_v14 }
 0x439   :  { %2889 = vrot.lane.b32.xlu1 %v2866_v62, %s4139_s0  ;;  %2833 = vrot.lane.b32.xlu0 %v2866_v62, %s4140_s24 }
 0x43d   :  { %3065 = vrot.lane.b32.xlu1 %v2866_v62, %s4143_s29  ;;  %2949 = vrot.lane.b32.xlu0 %v2866_v62, %s4141_s25 }
 0x43f   :  { %v2701_v15 = vpop.f32.mrb[20].mxu1 }
 0x440   :  { %v3867_v38 = vpop.f32.mrb[21].mxu1  ;;  %v2702_v12 = vadd.f32 %v2701_v15, %v2356_v58 }
 0x441   :  { %3181 = vrot.lane.b32.xlu1 %v2866_v62, %s4145_s10  ;;  %3005 = vrot.lane.b32.xlu0 %v2866_v62, %s4142_s28  ;;  %v2704_v5 = vpop.f32.mrb[22].mxu1 }
 0x442   :  { %v3868_v32 = vpop.f32.mrb[23].mxu1  ;;  %v2713_v35 = vmax.f32 %v2702_v12, 0.0 }
 0x444   :  { %v2720_v50 = vpack.c.bf16 %v2713_v35, %v2713_v35 }
 0x445   :  { %3121 = vrot.lane.b32.xlu0 %v2866_v62, %s4144_s30  ;;  %2831 = vrot.lane.b32.xlu1 %v2808_v44, %s4140_s24 }
 0x446   :  { %v2759_v56 = vrot.slane %v2720_v50, %v4333_v34 }
 0x449   :  { %3237 = vrot.lane.b32.xlu0 %v2866_v62, %s4146_s11  ;;  %2947 = vrot.lane.b32.xlu1 %v2808_v44, %s4141_s25 }
 0x44a   :  { %v2660_v1 = vpop.f32.mrb[20].mxu0 }
 0x44b   :  { %v2661_v8 = vadd.f32 %v2660_v1, %v2356_v58  ;;  %v2662_v3 = vpop.f32.mrb[21].mxu0 }
 0x44c   :  { %v2663_v40 = vadd.f32 %v2662_v3, %v2356_v58  ;;  %v2664_v7 = vpop.f32.mrb[22].mxu0 }
 0x44d   :  { %2891 = vrot.lane.b32.xlu0 %v2873_v48, %s4139_s0  ;;  %3007 = vrot.lane.b32.xlu1 %v2873_v48, %s4142_s28  ;;  %v2711_v61 = vmax.f32 %v2661_v8, 0.0  ;;  %v2665_v6 = vpop.f32.mrb[23].mxu0 }
 0x44e   :  { %v2712_v9 = vmax.f32 %v2663_v40, 0.0 }
 0x450   :  { %v3760_v51 = vpack.c.bf16 %v2712_v9, %v2711_v61 }
 0x451   :  { %3063 = vrot.lane.b32.xlu0 %v2808_v44, %s4143_s29  ;;  %3123 = vrot.lane.b32.xlu1 %v2873_v48, %s4144_s30 }
 0x452   :  { %v2752_v57 = vrot.slane %v3760_v51, %v4333_v34 }
 0x454   :  { %v2760_v29 = vcombine.low %v2752_v57, %v2759_v56 }
 0x455   :  { %3179 = vrot.lane.b32.xlu0 %v2808_v44, %s4145_s10  ;;  %3239 = vrot.lane.b32.xlu1 %v2873_v48, %s4146_s11 }
 0x456   :  { %2764 = vst [vmem:[#allocation4 + $0x8] sm:$0x3f] %v2760_v29 }
 0x45d   :  { %v3761_v30 = vld.sshfl [vmem:[#allocation4 + $0x8] sm:$0x33 pattern:$0x76325410] }
 0x45e   :  { %v2856_v53 = vld [vmem:[#allocation4 + $0x8] sm:$0x3f]  ;;  %2796 = vst [vmem:[#allocation5 + $0x10] sm:$0x33] %v3761_v30 }
 0x45f   :  { %v2881_v28 = vrot.slane %v2856_v53, %v4333_v34  ;;  %v2798_v36 = vld [vmem:[#allocation4 + $0x8] sm:$0x3f]  ;;  %v2874_v18 = vcombine.high %v2856_v53, %v2856_v53 }
 0x460   :  { %v2830_v60 = vrot.slane %v2798_v36, %v4333_v34  ;;  %v2972_v63 = vld [vmem:[#allocation4 + $0x8] sm:$0x3f]  ;;  %v2816_v23 = vcombine.low %v2798_v36, %v2798_v36 }
 0x461   :  { %2893 = vrot.lane.b32.xlu0 %v2881_v28, %s4139_s0  ;;  %v2914_v41 = vld [vmem:[#allocation4 + $0x8] sm:$0x3f]  ;;  %v2997_v21 = vrot.slane %v2972_v63, %v4333_v34  ;;  %v2888_v2 = vrot.slane %v2874_v18, %v4333_v34  ;;  %v2990_v54 = vcombine.high %v2972_v63, %v2972_v63 }
 0x462   :  { %2837 = vrot.lane.b32.xlu1 %v2830_v60, %s4140_s24  ;;  %v2823_v4 = vrot.slane %v2816_v23, %v4333_v34  ;;  %v3088_v25 = vld [vmem:[#allocation4 + $0x8] sm:$0x3f]  ;;  %v2932_v59 = vcombine.low %v2914_v41, %v2914_v41  ;;  %v2946_v42 = vrot.slane %v2914_v41, %v4333_v34 }
 0x463   :  { %v3030_v31 = vld [vmem:[#allocation4 + $0x8] sm:$0x3f]  ;;  %v3113_v45 = vrot.slane %v3088_v25, %v4333_v34  ;;  %v3004_v55 = vrot.slane %v2990_v54, %v4333_v34  ;;  %v3106_v10 = vcombine.high %v3088_v25, %v3088_v25 }
 0x464   :  { %v2939_v19 = vrot.slane %v2932_v59, %v4333_v34  ;;  %v3204_v58 = vld [vmem:[#allocation4 + $0x8] sm:$0x3f]  ;;  %v3048_v33 = vcombine.low %v3030_v31, %v3030_v31  ;;  %v3062_v52 = vrot.slane %v3030_v31, %v4333_v34 }
 0x465   :  { %3009 = vrot.lane.b32.xlu0 %v2997_v21, %s4142_s28  ;;  %v3146_v17 = vld [vmem:[#allocation4 + $0x8] sm:$0x3f]  ;;  %v3229_v37 = vrot.slane %v3204_v58, %v4333_v34  ;;  %v3120_v24 = vrot.slane %v3106_v10, %v4333_v34  ;;  %v3222_v47 = vcombine.high %v3204_v58, %v3204_v58 }
 0x466   :  { %2835 = vrot.lane.b32.xlu1 %v2823_v4, %s4140_s24  ;;  %v3055_v22 = vrot.slane %v3048_v33, %v4333_v34  ;;  %v3164_v11 = vcombine.low %v3146_v17, %v3146_v17  ;;  %v3178_v13 = vrot.slane %v3146_v17, %v4333_v34 }
 0x467   :  { %v3236_v27 = vrot.slane %v3222_v47, %v4333_v34 }
 0x468   :  { %v3171_v46 = vrot.slane %v3164_v11, %v4333_v34 }
 0x469   :  { %3125 = vrot.lane.b32.xlu0 %v3113_v45, %s4144_s30 }
 0x46a   :  { %2951 = vrot.lane.b32.xlu1 %v2939_v19, %s4141_s25 }
 0x46d   :  { %3241 = vrot.lane.b32.xlu0 %v3229_v37, %s4146_s11 }
 0x46e   :  { %3067 = vrot.lane.b32.xlu1 %v3055_v22, %s4143_s29 }
 0x471   :  { %2895 = vrot.lane.b32.xlu0 %v2888_v2, %s4139_s0 }
 0x472   :  { %3183 = vrot.lane.b32.xlu1 %v3171_v46, %s4145_s10 }
 0x475   :  { %3011 = vrot.lane.b32.xlu0 %v3004_v55, %s4142_s28 }
 0x476   :  { %2953 = vrot.lane.b32.xlu1 %v2946_v42, %s4141_s25 }
 0x479   :  { %3127 = vrot.lane.b32.xlu0 %v3120_v24, %s4144_s30 }
 0x47a   :  { %3069 = vrot.lane.b32.xlu1 %v3062_v52, %s4143_s29 }
 0x47d   :  { %3243 = vrot.lane.b32.xlu0 %v3236_v27, %s4146_s11 }
 0x47e   :  { %3185 = vrot.lane.b32.xlu1 %v3178_v13, %s4145_s10 }
 0x482   :  { %3285 = vperm.xlu1 %3896, %v3282_v26  }
 0x4ab   :  { %v2890_v16 = vpop.permute.xlu1 %2889  ;;  %v5120_v20 = vpop.permute.xlu0 %2833 }
 0x4ac   :  { %v2840_v38 = vrot.slane %v5120_v20, 4  ;;  %v2897_v61 = vrot.slane %v2890_v16, 4 }
 0x4af   :  { %v5122_v49 = vpop.permute.xlu1 %3065  ;;  %v5124_v14 = vpop.permute.xlu0 %2949 }
 0x4b0   :  { %v2956_v1 = vrot.slane %v5124_v14, 4  ;;  %v3072_v28 = vrot.slane %v5122_v49, 4 }
 0x4b3   :  { %v5126_v62 = vpop.permute.xlu1 %3181  ;;  %v3006_v15 = vpop.permute.xlu0 %3005 }
 0x4b4   :  { %v3013_v6 = vrot.slane %v3006_v15, 4  ;;  %v3188_v31 = vrot.slane %v5126_v62, 4 }
 0x4b7   :  { %v3122_v34 = vpop.permute.xlu0 %3121  ;;  %v2832_v43 = vpop.permute.xlu1 %2831 }
 0x4b8   :  { %v2839_v5 = vrot.slane %v2832_v43, 4  ;;  %v3129_v36 = vrot.slane %v3122_v34, 4 }
 0x4ba   :  { %v2843_v32 = vsel %vm632_vm1, %v2839_v5, %v2840_v38 }
 0x4bb   :  { %v2844_v44 = vsel %vm634_vm2, %v2832_v43, %v2843_v32  ;;  %v3238_v12 = vpop.permute.xlu0 %3237  ;;  %v2948_v35 = vpop.permute.xlu1 %2947  ;;  %v5173_v32 = vld [vmem:[%s5257_s7] sm:$0x3]  ;;  %s4148_s7 = smov [#allocation9]  }
 0x4bc   :  { %2852 = vst [vmem:[#allocation5] sm:$0xcc] %v2844_v44  ;;  %v2955_v48 = vrot.slane %v2948_v35, 4  ;;  %v3245_v45 = vrot.slane %v3238_v12, 4  ;;  %s3596_s25 = sshll.u32 %s4148_s7, 4  ;;  %s3597_s25 = int_to_ptr.vmem [resolvable:$true] %s3596_s25 }
 0x4bd   :  { %s4107_s28 = scalar_lea.vmem %s3597_s25, 448  ;;  %p4112_p9 = scmp.lt.s32.totalorder %s3597_s25, %s3597_s25 }
 0x4be   :  { %v2959_v8 = vsel %vm632_vm1, %v2955_v48, %v2956_v1  ;;  %p4108_p8 = scmp.ne.s32.totalorder %s3597_s25, %s4107_s28  ;;  %p4113_p10 = scmp.lt.s32.totalorder %s4107_s28, %s4107_s28 }
 0x4bf   :  { %v2960_v3 = vsel %vm700_vm4, %v2948_v35, %v2959_v8  ;;  %v2892_v40 = vpop.permute.xlu0 %2891  ;;  %v5138_v7 = vpop.permute.xlu1 %3007 }
 0x4c0   :  { %2968 = vst [vmem:[#allocation5 + $0x1c] sm:$0xcc] %v2960_v3  ;;  %v2898_v50 = vrot.slane %v2892_v40, 4  ;;  %v3014_v9 = vrot.slane %v5138_v7, 4  ;;  %p4114_p11 = por %p4113_p10, %p4112_p9 }
 0x4c2   :  { %v2901_v51 = vsel %vm632_vm1, %v2897_v61, %v2898_v50  ;;  %v3017_v56 = vsel %vm632_vm1, %v3013_v6, %v3014_v9  ;;  %p4115_p12 = pnand %p4114_p11, %p4108_p8 }
 0x4c3   :  { %v2902_v57 = vsel %vm667_vm3, %v2890_v16, %v2901_v51  ;;  %v3018_v29 = vsel %vm733_vm5, %v3006_v15, %v3017_v56  ;;  %v3064_v30 = vpop.permute.xlu0 %3063  ;;  %v5145_v53 = vpop.permute.xlu1 %3123 }
 0x4c4   :  { %2910 = vst [vmem:[#allocation5 + $0x1c] sm:$0x33] %v2902_v57  ;;  %3026 = vst [vmem:[#allocation5 + $0x38] sm:$0x33] %v3018_v29  ;;  %v3071_v60 = vrot.slane %v3064_v30, 4  ;;  %v3130_v63 = vrot.slane %v5145_v53, 4 }
 0x4c6   :  { %v3075_v23 = vsel %vm632_vm1, %v3071_v60, %v3072_v28  ;;  %v3133_v41 = vsel %vm632_vm1, %v3129_v36, %v3130_v63 }
 0x4c7   :  { %v3076_v21 = vsel %vm766_vm6, %v3064_v30, %v3075_v23  ;;  %v3134_v4 = vsel %vm799_vm7, %v3122_v34, %v3133_v41  ;;  %v3180_v25 = vpop.permute.xlu0 %3179  ;;  %v5155_v59 = vpop.permute.xlu1 %3239 }
 0x4c8   :  { %3084 = vst [vmem:[#allocation5 + $0x38] sm:$0xcc] %v3076_v21  ;;  %3142 = vst [vmem:[#allocation5 + $0x54] sm:$0x33] %v3134_v4  ;;  %v3187_v19 = vrot.slane %v3180_v25, 4  ;;  %v3246_v58 = vrot.slane %v5155_v59, 4 }
 0x4ca   :  { %v3191_v33 = vsel %vm632_vm1, %v3187_v19, %v3188_v31  ;;  %v3249_v17 = vsel %vm632_vm1, %v3245_v45, %v3246_v58 }
 0x4cb   :  { %v3192_v37 = vsel %vm832_vm8, %v3180_v25, %v3191_v33  ;;  %v3250_v18 = vsel %vm865_vm9, %v3238_v12, %v3249_v17  ;;  %v4055_v22 = vld [vmem:[#allocation5] ss:$28 sps:$4 sm:$0xff]  }
 0x4cc   :  { %v4057_v11 = vld [vmem:[#allocation5 + $0x4] ss:$28 sps:$4 sm:$0xff]   ;;  %3200 = vst [vmem:[#allocation5 + $0x54] sm:$0xcc] %v3192_v37  ;;  %3258 = vst [vmem:[#allocation5 + $0x70] sm:$0x33] %v3250_v18 }
 0x4cd   :  { %3404 = vmatprep.subr.bf16.mxu0 %v4057_v11 }
 0x4ce   :  { %3405 = vmatpush1.bf16.msra.mxu0 %v4055_v22 }
 0x4d3   :  { %v2894_v2 = vpop.permute.xlu0 %2893  ;;  %v4058_v54 = vld [vmem:[#allocation5 + $0x38] ss:$28 sps:$4 sm:$0xff]  }
 0x4d4   :  { %v4060_v46 = vld [vmem:[#allocation5 + $0x3c] ss:$28 sps:$4 sm:$0xff]   ;;  %v2899_v55 = vrot.slane %v2894_v2, 4  ;;  %v2838_v10 = vpop.permute.xlu1 %2837  ;;  %v3278_v42 = vld [vmem:[#allocation5 + $0x70] sm:$0x33] }
 0x4d5   :  { %3406 = vmatprep.subr.bf16.mxu0 %v4060_v46  ;;  %v3779_v24 = vcombine.high %v3278_v42, %v3278_v42  ;;  %v3778_v47 = vcombine.low %v3278_v42, %v3278_v42  ;;  %v2842_v15 = vrot.slane %v2838_v10, 4 }
 0x4d6   :  { %v2903_v52 = vsel %vm632_vm1, %v2898_v50, %v2899_v55  ;;  %3407 = vmatpush1.bf16.msra.mxu0 %v4058_v54 }
 0x4d7   :  { %v2904_v27 = vsel %vm667_vm3, %v2892_v40, %v2903_v52  ;;  %v3010_v13 = vpop.permute.xlu0 %3009  ;;  %3785 = vmatprep.subr.msk.bf16.mxu0 %vm3382_vm11, %v3779_v24  ;;  %v3384_v43 = vsel %vm3382_vm11, %v3778_v47, 0 }
 0x4d8   :  { %2911 = vst [vmem:[#allocation5 + $0x24] sm:$0x33] %v2904_v27  ;;  %v3015_v26 = vrot.slane %v3010_v13, 4  ;;  %v2836_v16 = vpop.permute.xlu1 %2835 }
 0x4d9   :  { %v2841_v34 = vrot.slane %v2836_v16, 4 }
 0x4da   :  { %v3019_v5 = vsel %vm632_vm1, %v3014_v9, %v3015_v26  ;;  %3409 = vmatpush1.bf16.msra.mxu0 %v3384_v43 }
 0x4db   :  { %v3020_v44 = vsel %vm733_vm5, %v5138_v7, %v3019_v5  ;;  %v2845_v12 = vsel %vm632_vm1, %v2840_v38, %v2841_v34  ;;  %v2847_v35 = vsel %vm632_vm1, %v2841_v34, %v2842_v15  ;;  %v3126_v48 = vpop.permute.xlu0 %3125 }
 0x4dc   :  { %3027 = vst [vmem:[#allocation5 + $0x40] sm:$0x33] %v3020_v44  ;;  %v2846_v8 = vsel %vm634_vm2, %v5120_v20, %v2845_v12  ;;  %v2848_v3 = vsel %vm634_vm2, %v2836_v16, %v2847_v35  ;;  %v3131_v40 = vrot.slane %v3126_v48, 4  ;;  %v2952_v61 = vpop.permute.xlu1 %2951  ;;  %v4074_v12 = vld [vmem:[#allocation5 + $0x18] ss:$28 sps:$4 sm:$0xff]  }
 0x4dd   :  { %2853 = vst [vmem:[#allocation5 + $0x8] sm:$0xcc] %v2846_v8  ;;  %2854 = vst [vmem:[#allocation5 + $0x10] sm:$0xcc] %v2848_v3  ;;  %v2957_v6 = vrot.slane %v2952_v61, 4  ;;  %3786 = vmatmul.mubr.msk.bf16.vlgmr.msra.gmra.mrb[24].mxu0 %vm3378_vm12, %v5173_v32 }
 0x4de   :  { %v3135_v7 = vsel %vm632_vm1, %v3130_v63, %v3131_v40  ;;  %3518 = vmatprep.mubr.bf16.mxu0 %v4136_v0  ;;  %v4078_v35 = vld [vmem:[#allocation5 + $0x50] ss:$28 sps:$4 sm:$0xff]   ;;  %v4081_v8 = vld [vmem:[#allocation5 + $0x88] ss:$0 sps:$4 sm:$0x33]  }
 0x4df   :  { %v3136_v38 = vsel %vm799_vm7, %v5145_v53, %v3135_v7  ;;  %v2961_v20 = vsel %vm632_vm1, %v2956_v1, %v2957_v6  ;;  %v3242_v50 = vpop.permute.xlu0 %3241  ;;  %v3402_v7 = vsel %vm3382_vm11, %v4081_v8, 0 }
 0x4e0   :  { %3143 = vst [vmem:[#allocation5 + $0x5c] sm:$0x33] %v3136_v38  ;;  %v2962_v9 = vsel %vm700_vm4, %v5124_v14, %v2961_v20  ;;  %v3247_v51 = vrot.slane %v3242_v50, 4  ;;  %v3068_v56 = vpop.permute.xlu1 %3067 }
 0x4e1   :  { %2969 = vst [vmem:[#allocation5 + $0x24] sm:$0xcc] %v2962_v9  ;;  %v3073_v57 = vrot.slane %v3068_v56, 4 }
 0x4e2   :  { %v3251_v29 = vsel %vm632_vm1, %v3246_v58, %v3247_v51 }
 0x4e3   :  { %v3252_v0 = vsel %vm865_vm9, %v5155_v59, %v3251_v29  ;;  %v3077_v30 = vsel %vm632_vm1, %v3072_v28, %v3073_v57  ;;  %v2896_v53 = vpop.permute.xlu0 %2895 }
 0x4e4   :  { %3259 = vst [vmem:[#allocation5 + $0x78] sm:$0x33] %v3252_v0  ;;  %v3078_v1 = vsel %vm766_vm6, %v5122_v49, %v3077_v30  ;;  %v2900_v36 = vrot.slane %v2896_v53, 4  ;;  %v3184_v14 = vpop.permute.xlu1 %3183 }
 0x4e5   :  { %3085 = vst [vmem:[#allocation5 + $0x40] sm:$0xcc] %v3078_v1  ;;  %v3189_v60 = vrot.slane %v3184_v14, 4 }
 0x4e6   :  { %v2905_v63 = vsel %vm632_vm1, %v2899_v55, %v2900_v36 }
 0x4e7   :  { %v2906_v23 = vsel %vm667_vm3, %v2894_v2, %v2905_v63  ;;  %v3193_v41 = vsel %vm632_vm1, %v3188_v31, %v3189_v60  ;;  %v3012_v21 = vpop.permute.xlu0 %3011 }
 0x4e8   :  { %2912 = vst [vmem:[#allocation5 + $0x2c] sm:$0x33] %v2906_v23  ;;  %v3194_v28 = vsel %vm832_vm8, %v5126_v62, %v3193_v41  ;;  %v3016_v4 = vrot.slane %v3012_v21, 4  ;;  %v2954_v25 = vpop.permute.xlu1 %2953  ;;  %v4063_v49 = vld [vmem:[#allocation5 + $0x8] ss:$28 sps:$4 sm:$0xff]  }
 0x4e9   :  { %v4065_v59 = vld [vmem:[#allocation5 + $0xc] ss:$28 sps:$4 sm:$0xff]   ;;  %3201 = vst [vmem:[#allocation5 + $0x5c] sm:$0xcc] %v3194_v28  ;;  %v2958_v45 = vrot.slane %v2954_v25, 4 }
 0x4ea   :  { %v3021_v19 = vsel %vm632_vm1, %v3015_v26, %v3016_v4  ;;  %3445 = vmatprep.subr.bf16.mxu1 %v4065_v59 }
 0x4eb   :  { %v3022_v58 = vsel %vm733_vm5, %v3010_v13, %v3021_v19  ;;  %v2963_v33 = vsel %vm632_vm1, %v2957_v6, %v2958_v45  ;;  %v3128_v17 = vpop.permute.xlu0 %3127  ;;  %3446 = vmatpush1.bf16.msra.mxu1 %v4063_v49  ;;  %v3279_v46 = vld [vmem:[#allocation5 + $0x78] sm:$0x33] }
 0x4ec   :  { %3028 = vst [vmem:[#allocation5 + $0x48] sm:$0x33] %v3022_v58  ;;  %v2964_v31 = vsel %vm700_vm4, %v2952_v61, %v2963_v33  ;;  %v3132_v37 = vrot.slane %v3128_v17, 4  ;;  %v3070_v62 = vpop.permute.xlu1 %3069  ;;  %v3781_v13 = vcombine.high %v3279_v46, %v3279_v46  ;;  %v3780_v26 = vcombine.low %v3279_v46, %v3279_v46 }
 0x4ed   :  { %2970 = vst [vmem:[#allocation5 + $0x2c] sm:$0xcc] %v2964_v31  ;;  %v3074_v18 = vrot.slane %v3070_v62, 4 }
 0x4ee   :  { %v3137_v22 = vsel %vm632_vm1, %v3131_v40, %v3132_v37  ;;  %v3390_v44 = vsel %vm3382_vm11, %v3780_v26, 0 }
 0x4ef   :  { %v3138_v11 = vsel %vm799_vm7, %v3126_v48, %v3137_v22  ;;  %v3079_v2 = vsel %vm632_vm1, %v3073_v57, %v3074_v18  ;;  %v3244_v54 = vpop.permute.xlu0 %3243 }
 0x4f0   :  { %3144 = vst [vmem:[#allocation5 + $0x64] sm:$0x33] %v3138_v11  ;;  %v3080_v55 = vsel %vm766_vm6, %v3068_v56, %v3079_v2  ;;  %v3248_v10 = vrot.slane %v3244_v54, 4  ;;  %v3186_v42 = vpop.permute.xlu1 %3185  ;;  %v4066_v24 = vld [vmem:[#allocation5 + $0x40] ss:$28 sps:$4 sm:$0xff]  }
 0x4f1   :  { %v4068_v47 = vld [vmem:[#allocation5 + $0x44] ss:$28 sps:$4 sm:$0xff]   ;;  %3086 = vst [vmem:[#allocation5 + $0x48] sm:$0xcc] %v3080_v55  ;;  %v3190_v52 = vrot.slane %v3186_v42, 4 }
 0x4f2   :  { %v3253_v27 = vsel %vm632_vm1, %v3247_v51, %v3248_v10  ;;  %3447 = vmatprep.subr.bf16.mxu1 %v4068_v47 }
 0x4f3   :  { %v3254_v16 = vsel %vm865_vm9, %v3242_v50, %v3253_v27  ;;  %v3195_v15 = vsel %vm632_vm1, %v3189_v60, %v3190_v52  ;;  %3448 = vmatpush1.bf16.msra.mxu1 %v4066_v24 }
 0x4f4   :  { %3260 = vst [vmem:[#allocation5 + $0x80] sm:$0x33] %v3254_v16  ;;  %v3196_v34 = vsel %vm832_vm8, %v3184_v14, %v3195_v15  ;;  %3787 = vmatprep.subr.msk.bf16.mxu1 %vm3382_vm11, %v3781_v13  ;;  %v4070_v43 = vld [vmem:[#allocation5 + $0x10] ss:$28 sps:$4 sm:$0xff]  }
 0x4f5   :  { %v4072_v5 = vld [vmem:[#allocation5 + $0x14] ss:$28 sps:$4 sm:$0xff]   ;;  %3202 = vst [vmem:[#allocation5 + $0x64] sm:$0xcc] %v3196_v34 }
 0x4f6   :  { %3486 = vmatprep.subr.bf16.mxu0 %v4072_v5 }
 0x4f7   :  { %3450 = vmatpush1.bf16.msra.mxu1 %v3390_v44  ;;  %3487 = vmatpush1.bf16.msra.mxu0 %v4070_v43 }
 0x4f8   :  { %3869 = vmatprep.subr.bf16.mxu1 %v4137_v39 }
 0x4fa   :  { %3788 = vmatmul.mubr.msk.bf16.vlgmr.msra.gmra.mrb[24].mxu1 %vm3378_vm12, %v5173_v32 }
 0x4fb   :  { %3870 = vmatpush3.bf16.msra.mxu1 %v4074_v12  ;;  %v3280_v48 = vld [vmem:[#allocation5 + $0x80] sm:$0x33]  ;;  %3875 = vmatprep.mubr.msk.bf16.mxu1 %vm4138_vm0, %v4137_v39 }
 0x4fc   :  { %v4075_v3 = vld [vmem:[#allocation5 + $0x48] ss:$28 sps:$4 sm:$0xff]   ;;  %3871 = vmatprep.subr.bf16.mxu1 %v4137_v39  ;;  %v3783_v61 = vcombine.high %v3280_v48, %v3280_v48  ;;  %v3782_v6 = vcombine.low %v3280_v48, %v3280_v48 }
 0x4fd   :  { %v4077_v40 = vld [vmem:[#allocation5 + $0x4c] ss:$28 sps:$4 sm:$0xff]  }
 0x4fe   :  { %3488 = vmatprep.subr.bf16.mxu0 %v4077_v40  ;;  %v3396_v38 = vsel %vm3382_vm11, %v3782_v6, 0 }
 0x4ff   :  { %3489 = vmatpush1.bf16.msra.mxu0 %v4075_v3  ;;  %3872 = vmatpush3.bf16.msra.mxu1 %v4078_v35 }
 0x500   :  { %3789 = vmatprep.subr.msk.bf16.mxu0 %vm3382_vm11, %v3783_v61  ;;  %3873 = vmatprep.subr.bf16.mxu1 %v4137_v39 }
 0x501   :  { %v3286_v20 = vpop.permute.xlu1 %3285 }
 0x503   :  { %3491 = vmatpush1.bf16.msra.mxu0 %v3396_v38  ;;  %3874 = vmatpush3.bf16.msra.mxu1 %v3402_v7 }
 0x506   :  { %3790 = vmatmul.mubr.msk.bf16.vlgmr.msra.gmra.mrb[28].mxu0 %vm3378_vm12, %v5173_v32  ;;  %3876 = vmatmul.mubr.msk.bf16.vlgmr.msra.gmra.mrb[28].mxu1 %vm3378_vm12, %v5173_v32 }
 0x5b0   :  { %v3438_v50 = vpop.f32.mrb[24].mxu0 }
 0x5b1   :  { %v3440_v9 = vpop.f32.mrb[25].mxu0  ;;  %v3439_v51 = vadd.f32 %v3438_v50, %v3286_v20 }
 0x5b2   :  { %v3442_v56 = vpop.f32.mrb[26].mxu0  ;;  %v3441_v57 = vadd.f32 %v3440_v9, %v3286_v20 }
 0x5b3   :  { %v3567_v29 = vmax.f32 %v3439_v51, 0.0  ;;  %v3443_v39 = vpop.f32.mrb[27].mxu0 }
 0x5b4   :  { %v3568_v0 = vmax.f32 %v3441_v57, 0.0 }
 0x5b6   :  { %v3580_v30 = vcombine.low %v3567_v29, %v3568_v0 }
 0x5b8   :  { %3586 = vst [vmem:[#allocation9] sm:$0xff] %v3580_v30 }
 0x5cd   :  { %v3479_v53 = vpop.f32.mrb[24].mxu1 }
 0x5ce   :  { %v3480_v1 = vadd.f32 %v3479_v53, %v3286_v20  ;;  %v3481_v36 = vpop.f32.mrb[25].mxu1 }
 0x5cf   :  { %v3482_v14 = vadd.f32 %v3481_v36, %v3286_v20  ;;  %v3483_v60 = vpop.f32.mrb[26].mxu1 }
 0x5d0   :  { %v3569_v63 = vmax.f32 %v3480_v1, 0.0  ;;  %v3484_v23 = vpop.f32.mrb[27].mxu1 }
 0x5d1   :  { %v3570_v41 = vmax.f32 %v3482_v14, 0.0 }
 0x5d3   :  { %v3581_v32 = vcombine.low %v3569_v63, %v3570_v41 }
 0x5d5   :  { %3587 = vst [vmem:[#allocation9 + $0x8] sm:$0xff] %v3581_v32 }
 0x5d9   :  { %v3520_v21 = vpop.f32.mrb[28].mxu0  ;;  %v3561_v28 = vpop.f32.mrb[28].mxu1 }
 0x5da   :  { %v3521_v4 = vadd.f32 %v3520_v21, %v3286_v20  ;;  %v3562_v25 = vadd.f32 %v3561_v28, %v3286_v20  ;;  %v3522_v49 = vpop.f32.mrb[29].mxu0  ;;  %v3877_v59 = vpop.f32.mrb[29].mxu1 }
 0x5db   :  { %v3523_v45 = vadd.f32 %v3522_v49, %v3286_v20  ;;  %v3524_v19 = vpop.f32.mrb[30].mxu0  ;;  %v3564_v58 = vpop.f32.mrb[30].mxu1 }
 0x5dc   :  { %v3571_v33 = vmax.f32 %v3521_v4, 0.0  ;;  %v3573_v17 = vmax.f32 %v3562_v25, 0.0  ;;  %v3525_v31 = vpop.f32.mrb[31].mxu0  ;;  %v3878_v37 = vpop.f32.mrb[31].mxu1 }
 0x5dd   :  { %v3572_v62 = vmax.f32 %v3523_v45, 0.0 }
 0x5de   :  { %3589 = vst [vmem:[#allocation9 + $0x18] sm:$0xf] %v3573_v17 }
 0x5df   :  { %v3582_v18 = vcombine.low %v3571_v33, %v3572_v62 }
 0x5e1   :  { %3588 = vst [vmem:[#allocation9 + $0x10] sm:$0xff] %v3582_v18 }
 0x5e2   :  { %4118 = shalt.err (!%p4115_p12)
}
 0x5e3   :  { %s4119_s10 = scalar_lea.hbm %s5259_s9, 448 }
 0x5e4   :  { %p4120_p13 = scmp.ne.s32.totalorder %s5259_s9, %s4119_s10  ;;  %p4123_p0 = scmp.lt.u32.totalorder %s4119_s10, %s5259_s9 }
 0x5e6   :  { %p4125_p1 = pnand %p4123_p0, %p4120_p13 }
 0x5e8   :  { %4128 = shalt.err (!%p4125_p1)
}
 0x5e9   :  { %3599 = dma.vmem_to_hbm [thread:$0]  %s3597_s25, 448, %s5259_s9, [#allocation8]  }
 0x5ea   :  { %4131 = dma.done.wait [#allocation8], 448  }
 0x5eb   :  { %4132 = vsyncadd [#allocation8], 4294966848 }
 0x5ec   :  { %3603 = vsyncpa [#allocation7], 1 }
 0x5ed   :  { %3604 = vsyncpa [#allocation8], 1 }

</bundles_post_ra>
